<compile_context>
chip_gen: v6e
topology: v6e:2x2x1
jax: 0.10.0
libtpu: 0.0.40
codegen_flags: <defaults>
</compile_context>

<pallas_src>
import jax
import jax.numpy as jnp
import numpy as np
from jax.experimental import pallas as pl
from jax.experimental.pallas import tpu as pltpu

KSIZE = 3
PRELU_ALPHA = 0.25
LANE = 128


def _round_up(x, m):
    return ((x + m - 1) // m) * m


# ---------------------------------------------------------------------------
# Pallas kernel: whole network, VMEM resident, one MXU matmul per layer
# ---------------------------------------------------------------------------
def _make_convnet_kernel(num_layers):
    def kernel(*refs):
        x_ref = refs[0]
        wb = refs[1:1 + 2 * num_layers]                  # w0,b0,w1,b1,...
        o_ref = refs[1 + 2 * num_layers]
        lhss = refs[2 + 2 * num_layers:]                 # per-layer LHS scratch

        def build_lhs(dst_ref, act_bf16):
            # K-stacked LHS: one shifted row-slice per tap, then a single
            # lane-dense full-tile store.  Tap widths are multiples of 128,
            # so concat boundaries land on vreg lane boundaries.
            h_out = dst_ref.shape[0]
            taps = [act_bf16[kh:kh + h_out, :] for kh in range(KSIZE)]
            dst_ref[...] = jnp.concatenate(taps, axis=1)

        # Single f32 -> bf16 cast of the (lane-padded) input activation.
        build_lhs(lhss[0], x_ref[...].astype(jnp.bfloat16))

        for l in range(num_layers):
            w_ref, b_ref = wb[2 * l], wb[2 * l + 1]
            # ONE matmul per layer (3 row taps fused along K), f32 accumulate;
            # folded conv-bias / BatchNorm added as a single bias row.
            acc = jnp.dot(lhss[l][...], w_ref[...],
                          preferred_element_type=jnp.float32) + b_ref[...]
            if l < num_layers - 1:
                y = jnp.where(acc > 0.0, acc, PRELU_ALPHA * acc)      # PReLU
                # Padded lanes stay exactly 0 (0 bias, 0 weight cols, PReLU(0)=0).
                build_lhs(lhss[l + 1], y.astype(jnp.bfloat16))
            else:
                o_ref[...] = jnp.tanh(acc).astype(o_ref.dtype)        # Tanh
    return kernel


# ---------------------------------------------------------------------------
# Host-side weight preparation (trace-time glue, runs once)
# ---------------------------------------------------------------------------
def _build_structured_layer(w, b, bn_scale, bn_shift, w_in, p_in, p_out):
    """Fold BN+bias and build the K-stacked banded weight (K*p_in, p_out).

    w: (Cout, Cin, K, K) PyTorch Conv2d layout (numpy).
    Structured[kh*p_in + wi*Cin+ci, wo*Cout+co] = w[co,ci,kh,wi-wo]*scale[co]
    for 0 <= wi-wo < K, else 0.  Padding rows/cols are zero.
    """
    cout, cin, k, _ = w.shape
    w_out = w_in - k + 1
    assert w_in * cin <= p_in and w_out * cout <= p_out
    w_f = (w * bn_scale[:, None, None, None]).astype(np.float32)
    b_f = (b * bn_scale + bn_shift).astype(np.float32)

    val = np.transpose(w_f, (2, 3, 1, 0))                # (kh, kw, Cin, Cout)
    wi = np.arange(w_in)[:, None]
    wo = np.arange(w_out)[None, :]
    kw = wi - wo                                         # (Wi, Wo)
    valid = (kw >= 0) & (kw < k)
    kw_c = np.clip(kw, 0, k - 1)
    w5 = val[:, kw_c, :, :]                              # (K, Wi, Wo, Cin, Cout)
    w5 = w5 * valid[None, :, :, None, None]
    ws = np.transpose(w5, (0, 1, 3, 2, 4)).reshape(k, w_in * cin, w_out * cout)

    ws_pad = np.zeros((k, p_in, p_out), np.float32)
    ws_pad[:, :w_in * cin, :w_out * cout] = ws
    ws_pad = ws_pad.reshape(k * p_in, p_out)

    b_row = np.zeros((1, p_out), np.float32)
    b_row[0, :w_out * cout] = np.tile(b_f, w_out)
    return jnp.asarray(ws_pad, jnp.bfloat16), jnp.asarray(b_row, jnp.float32)


def build_params(key, in_channels, out_channels, inner_channels, kernel_size,
                 factor, num_inner_layers):
    """Synthetic parameters with PyTorch-default Conv2d init + eval-mode BN."""
    layer_io = [(in_channels, inner_channels)]
    c = inner_channels
    for _ in range(num_inner_layers):
        layer_io.append((c, int(c * factor)))
        c = int(c * factor)
    layer_io.append((c, out_channels))

    eps = 1e-5
    params = []
    for li, (cin, cout) in enumerate(layer_io):
        key, kw_key, kb_key = jax.random.split(key, 3)
        fan_in = cin * kernel_size * kernel_size
        bound = 1.0 / np.sqrt(float(fan_in))
        wgt = jax.random.uniform(kw_key, (cout, cin, kernel_size, kernel_size),
                                 jnp.float32, -bound, bound)
        bias = jax.random.uniform(kb_key, (cout,), jnp.float32, -bound, bound)
        is_output = (li == len(layer_io) - 1)
        if is_output:                                    # norm=None on output block
            bn_scale = np.ones((cout,), np.float32)
            bn_shift = np.zeros((cout,), np.float32)
        else:                                            # BatchNorm2d eval defaults
            bn_scale = (np.ones((cout,), np.float32)
                        / np.sqrt(np.ones((cout,), np.float32) + eps))
            bn_shift = np.zeros((cout,), np.float32)
        params.append(dict(w=np.asarray(wgt), b=np.asarray(bias),
                           bn_scale=bn_scale, bn_shift=bn_shift))
    return params


def prepare_structured_params(params, w_in, c_in):
    """Per-layer (K-stacked structured weight, bias row) with lane padding."""
    structured = []
    num_layers = len(params)
    w_cur = w_in
    p_in = _round_up(w_in * c_in, LANE)                  # pad layer-0 input lanes
    for li, p in enumerate(params):
        cout = p["w"].shape[0]
        w_out = w_cur - KSIZE + 1
        last = (li == num_layers - 1)
        p_out = w_out * cout if last else _round_up(w_out * cout, LANE)
        ws, brow = _build_structured_layer(p["w"], p["b"], p["bn_scale"],
                                           p["bn_shift"], w_cur, p_in, p_out)
        structured.append((ws, brow))
        w_cur, p_in = w_out, p_out
    return structured


# ---------------------------------------------------------------------------
# Forward wrapper: one pallas_call for the whole network
# ---------------------------------------------------------------------------
def convnet_forward(x_nchw, structured_params):
    n, c0, h, w = x_nchw.shape
    num_layers = len(structured_params)
    p_in0 = structured_params[0][0].shape[0] // KSIZE

    # Single NCHW -> (N, H, W*C) relayout + zero lane-padding at network entry
    # (one small XLA fusion; per-image data is ~4 KB).
    x = jnp.transpose(x_nchw, (0, 2, 3, 1)).reshape(n, h, w * c0)
    x = x.astype(jnp.float32)
    if p_in0 > w * c0:
        x = jnp.pad(x, ((0, 0), (0, 0), (0, p_in0 - w * c0)))

    operands = [x]
    in_specs = [pl.BlockSpec((None, h, p_in0), lambda i: (i, 0, 0))]
    scratch_shapes = []
    flops = 0
    h_cur = h
    for ws, brow in structured_params:
        operands += [ws, brow]
        in_specs += [pl.BlockSpec(ws.shape, lambda i: (0, 0)),
                     pl.BlockSpec(brow.shape, lambda i: (0, 0))]
        h_cur -= KSIZE - 1
        scratch_shapes.append(pltpu.VMEM((h_cur, ws.shape[0]), jnp.bfloat16))
        flops += 2 * h_cur * ws.shape[0] * ws.shape[1]

    wc_final = structured_params[-1][1].shape[1]         # unpadded W_out*C_out
    w_final = w - num_layers * (KSIZE - 1)
    c_final = wc_final // w_final

    cost = pl.CostEstimate(
        flops=n * flops,
        transcendentals=n * h_cur * wc_final,            # final Tanh
        bytes_accessed=int(x.size) * 4
        + sum(int(ws.size) * 2 + int(b.size) * 4 for ws, b in structured_params)
        + n * h_cur * wc_final * 4)

    out = pl.pallas_call(
        _make_convnet_kernel(num_layers),
        out_shape=jax.ShapeDtypeStruct((n, h_cur, wc_final), jnp.float32),
        grid=(n,),
        in_specs=in_specs,
        out_specs=pl.BlockSpec((None, h_cur, wc_final), lambda i: (i, 0, 0)),
        scratch_shapes=scratch_shapes,
        compiler_params=pltpu.CompilerParams(
            dimension_semantics=("parallel",)),
        cost_estimate=cost,
    )(*operands)

    # (N, H_out, W_out*C_out) -> NCHW at network exit.
    return jnp.transpose(out.reshape(n, h_cur, w_final, c_final), (0, 3, 1, 2))


# ---------------------------------------------------------------------------
# Pure-JAX reference (for a sanity check against the fused kernel)
# ---------------------------------------------------------------------------
def reference_forward(x_nchw, params):
    y = x_nchw
    num_layers = len(params)
    for li, p in enumerate(params):
        w = jnp.asarray(p["w"], jnp.float32)             # (Cout, Cin, K, K)
        y = jax.lax.conv_general_dilated(
            y, w, window_strides=(1, 1), padding="VALID",
            dimension_numbers=("NCHW", "OIHW", "NCHW"))
        y = y + jnp.asarray(p["b"]).reshape(1, -1, 1, 1)
        y = (y * jnp.asarray(p["bn_scale"]).reshape(1, -1, 1, 1)
             + jnp.asarray(p["bn_shift"]).reshape(1, -1, 1, 1))
        if li == num_layers - 1:
            y = jnp.tanh(y)
        else:
            y = jnp.where(y > 0, y, PRELU_ALPHA * y)
    return y


if __name__ == "__main__":
    key = jax.random.PRNGKey(0)
    key, kx = jax.random.split(key)

    in_channels, out_channels, inner_channels = 4, 4, 4
    kernel_size, factor, num_inner_layers = 3, 2, 3

    params = build_params(key, in_channels, out_channels, inner_channels,
                          kernel_size, factor, num_inner_layers)

    # Input: NCHW. Five valid 3x3 convs: 16 -> 14 -> 12 -> 10 -> 8 -> 6.
    x = jax.random.normal(kx, (2, in_channels, 16, 16), jnp.float32)

    structured = prepare_structured_params(params, w_in=x.shape[3],
                                           c_in=x.shape[1])

    fwd = jax.jit(convnet_forward)
    y = jax.block_until_ready(fwd(x, structured))

    assert y.shape == (2, out_channels, 6, 6), y.shape
    assert bool(jnp.all(jnp.isfinite(y)))

    # Loose check vs. the f32 XLA reference (kernel uses bf16 operands).
    y_ref = jax.block_until_ready(reference_forward(x, params))
    max_err = float(jnp.max(jnp.abs(y - y_ref)))
    assert max_err < 5e-2, max_err

    print("KERNEL_OK")
</pallas_src>

<mosaic_0001>
module attributes {stable_mosaic.version = 11 : i64} {
  func.func @kernel(%arg0: i32, %arg1: memref<1x16x128xf32, #tpu.memory_space<vmem>>, %arg2: memref<384x128xbf16, #tpu.memory_space<vmem>>, %arg3: memref<1x128xf32, #tpu.memory_space<vmem>>, %arg4: memref<384x128xbf16, #tpu.memory_space<vmem>>, %arg5: memref<1x128xf32, #tpu.memory_space<vmem>>, %arg6: memref<384x256xbf16, #tpu.memory_space<vmem>>, %arg7: memref<1x256xf32, #tpu.memory_space<vmem>>, %arg8: memref<768x256xbf16, #tpu.memory_space<vmem>>, %arg9: memref<1x256xf32, #tpu.memory_space<vmem>>, %arg10: memref<768x24xbf16, #tpu.memory_space<vmem>>, %arg11: memref<1x24xf32, #tpu.memory_space<vmem>>, %arg12: memref<1x6x24xf32, #tpu.memory_space<vmem>>, %arg13: memref<14x384xbf16, #tpu.memory_space<vmem>>, %arg14: memref<12x384xbf16, #tpu.memory_space<vmem>>, %arg15: memref<10x384xbf16, #tpu.memory_space<vmem>>, %arg16: memref<8x768xbf16, #tpu.memory_space<vmem>>, %arg17: memref<6x768xbf16, #tpu.memory_space<vmem>>) attributes {dimension_semantics = [#tpu.dimension_semantics<parallel>], iteration_bounds = array<i64: 2>, scalar_prefetch = 0 : i64, scratch_operands = 5 : i64, tpu.core_type = #tpu.core_type<tc>, window_params = [{transform_indices = @transform_0, window_bounds = array<i64: 1, 16, 128>}, {pipeline_mode = #tpu.pipeline_mode<synchronous>, transform_indices = @transform_1, window_bounds = array<i64: 384, 128>}, {pipeline_mode = #tpu.pipeline_mode<synchronous>, transform_indices = @transform_2, window_bounds = array<i64: 1, 128>}, {pipeline_mode = #tpu.pipeline_mode<synchronous>, transform_indices = @transform_3, window_bounds = array<i64: 384, 128>}, {pipeline_mode = #tpu.pipeline_mode<synchronous>, transform_indices = @transform_4, window_bounds = array<i64: 1, 128>}, {pipeline_mode = #tpu.pipeline_mode<synchronous>, transform_indices = @transform_5, window_bounds = array<i64: 384, 256>}, {pipeline_mode = #tpu.pipeline_mode<synchronous>, transform_indices = @transform_6, window_bounds = array<i64: 1, 256>}, {pipeline_mode = #tpu.pipeline_mode<synchronous>, transform_indices = @transform_7, window_bounds = array<i64: 768, 256>}, {pipeline_mode = #tpu.pipeline_mode<synchronous>, transform_indices = @transform_8, window_bounds = array<i64: 1, 256>}, {pipeline_mode = #tpu.pipeline_mode<synchronous>, transform_indices = @transform_9, window_bounds = array<i64: 768, 24>}, {pipeline_mode = #tpu.pipeline_mode<synchronous>, transform_indices = @transform_10, window_bounds = array<i64: 1, 24>}, {transform_indices = @transform_11, window_bounds = array<i64: 1, 6, 24>}]} {
    %c0 = arith.constant 0 : index
    %c0_0 = arith.constant 0 : index
    %c0_1 = arith.constant 0 : index
    %0 = vector.load %arg1[%c0, %c0_0, %c0_1] : memref<1x16x128xf32, #tpu.memory_space<vmem>>, vector<1x16x128xf32>
    %1 = vector.shape_cast %0 : vector<1x16x128xf32> to vector<16x128xf32>
    %2 = arith.truncf %1 : vector<16x128xf32> to vector<16x128xbf16>
    %3 = vector.extract_strided_slice %2 {offsets = [0, 0], sizes = [14, 128], strides = [1, 1]} : vector<16x128xbf16> to vector<14x128xbf16>
    %4 = vector.extract_strided_slice %2 {offsets = [1, 0], sizes = [14, 128], strides = [1, 1]} : vector<16x128xbf16> to vector<14x128xbf16>
    %5 = vector.extract_strided_slice %2 {offsets = [2, 0], sizes = [14, 128], strides = [1, 1]} : vector<16x128xbf16> to vector<14x128xbf16>
    %6 = tpu.concatenate %3, %4, %5 in 1 : vector<14x128xbf16>, vector<14x128xbf16>, vector<14x128xbf16> -> vector<14x384xbf16>
    %c0_2 = arith.constant 0 : index
    %c0_3 = arith.constant 0 : index
    %7 = vector.load %arg13[%c0_2, %c0_3] : memref<14x384xbf16, #tpu.memory_space<vmem>>, vector<14x384xbf16>
    tpu.vector_store %arg13[%c0_2, %c0_3], %6 {strides = array<i32>} : memref<14x384xbf16, #tpu.memory_space<vmem>>, vector<14x384xbf16>,
    %c0_4 = arith.constant 0 : index
    %c0_5 = arith.constant 0 : index
    %8 = vector.load %arg13[%c0_4, %c0_5] : memref<14x384xbf16, #tpu.memory_space<vmem>>, vector<14x384xbf16>
    %c0_6 = arith.constant 0 : index
    %c0_7 = arith.constant 0 : index
    %9 = vector.load %arg2[%c0_6, %c0_7] : memref<384x128xbf16, #tpu.memory_space<vmem>>, vector<384x128xbf16>
    %cst = arith.constant dense<0.000000e+00> : vector<14x128xf32>
    %10 = tpu.matmul %8, %9, %cst {dimension_numbers = #tpu.dot_dimension_numbers<[1], [0], [0], [1], [0, 0, 1, 1], [], []>} : vector<14x384xbf16>, vector<384x128xbf16>, vector<14x128xf32> -> vector<14x128xf32>
    %c0_8 = arith.constant 0 : index
    %c0_9 = arith.constant 0 : index
    %11 = vector.load %arg3[%c0_8, %c0_9] : memref<1x128xf32, #tpu.memory_space<vmem>>, vector<1x128xf32>
    %12 = vector.broadcast %11 : vector<1x128xf32> to vector<14x128xf32>
    %13 = arith.addf %10, %12 : vector<14x128xf32>
    %cst_10 = arith.constant 0.000000e+00 : f32
    %14 = vector.broadcast %cst_10 : f32 to vector<14x128xf32>
    %15 = arith.cmpf ogt, %13, %14 : vector<14x128xf32>
    %cst_11 = arith.constant 2.500000e-01 : f32
    %16 = vector.broadcast %cst_11 : f32 to vector<14x128xf32>
    %17 = arith.mulf %16, %13 : vector<14x128xf32>
    %18 = arith.select %15, %13, %17 : vector<14x128xi1>, vector<14x128xf32>
    %19 = arith.truncf %18 : vector<14x128xf32> to vector<14x128xbf16>
    %20 = vector.extract_strided_slice %19 {offsets = [0, 0], sizes = [12, 128], strides = [1, 1]} : vector<14x128xbf16> to vector<12x128xbf16>
    %21 = vector.extract_strided_slice %19 {offsets = [1, 0], sizes = [12, 128], strides = [1, 1]} : vector<14x128xbf16> to vector<12x128xbf16>
    %22 = vector.extract_strided_slice %19 {offsets = [2, 0], sizes = [12, 128], strides = [1, 1]} : vector<14x128xbf16> to vector<12x128xbf16>
    %23 = tpu.concatenate %20, %21, %22 in 1 : vector<12x128xbf16>, vector<12x128xbf16>, vector<12x128xbf16> -> vector<12x384xbf16>
    %c0_12 = arith.constant 0 : index
    %c0_13 = arith.constant 0 : index
    %24 = vector.load %arg14[%c0_12, %c0_13] : memref<12x384xbf16, #tpu.memory_space<vmem>>, vector<12x384xbf16>
    tpu.vector_store %arg14[%c0_12, %c0_13], %23 {strides = array<i32>} : memref<12x384xbf16, #tpu.memory_space<vmem>>, vector<12x384xbf16>,
    %c0_14 = arith.constant 0 : index
    %c0_15 = arith.constant 0 : index
    %25 = vector.load %arg14[%c0_14, %c0_15] : memref<12x384xbf16, #tpu.memory_space<vmem>>, vector<12x384xbf16>
    %c0_16 = arith.constant 0 : index
    %c0_17 = arith.constant 0 : index
    %26 = vector.load %arg4[%c0_16, %c0_17] : memref<384x128xbf16, #tpu.memory_space<vmem>>, vector<384x128xbf16>
    %cst_18 = arith.constant dense<0.000000e+00> : vector<12x128xf32>
    %27 = tpu.matmul %25, %26, %cst_18 {dimension_numbers = #tpu.dot_dimension_numbers<[1], [0], [0], [1], [0, 0, 1, 1], [], []>} : vector<12x384xbf16>, vector<384x128xbf16>, vector<12x128xf32> -> vector<12x128xf32>
    %c0_19 = arith.constant 0 : index
    %c0_20 = arith.constant 0 : index
    %28 = vector.load %arg5[%c0_19, %c0_20] : memref<1x128xf32, #tpu.memory_space<vmem>>, vector<1x128xf32>
    %29 = vector.broadcast %28 : vector<1x128xf32> to vector<12x128xf32>
    %30 = arith.addf %27, %29 : vector<12x128xf32>
    %cst_21 = arith.constant 0.000000e+00 : f32
    %31 = vector.broadcast %cst_21 : f32 to vector<12x128xf32>
    %32 = arith.cmpf ogt, %30, %31 : vector<12x128xf32>
    %cst_22 = arith.constant 2.500000e-01 : f32
    %33 = vector.broadcast %cst_22 : f32 to vector<12x128xf32>
    %34 = arith.mulf %33, %30 : vector<12x128xf32>
    %35 = arith.select %32, %30, %34 : vector<12x128xi1>, vector<12x128xf32>
    %36 = arith.truncf %35 : vector<12x128xf32> to vector<12x128xbf16>
    %37 = vector.extract_strided_slice %36 {offsets = [0, 0], sizes = [10, 128], strides = [1, 1]} : vector<12x128xbf16> to vector<10x128xbf16>
    %38 = vector.extract_strided_slice %36 {offsets = [1, 0], sizes = [10, 128], strides = [1, 1]} : vector<12x128xbf16> to vector<10x128xbf16>
    %39 = vector.extract_strided_slice %36 {offsets = [2, 0], sizes = [10, 128], strides = [1, 1]} : vector<12x128xbf16> to vector<10x128xbf16>
    %40 = tpu.concatenate %37, %38, %39 in 1 : vector<10x128xbf16>, vector<10x128xbf16>, vector<10x128xbf16> -> vector<10x384xbf16>
    %c0_23 = arith.constant 0 : index
    %c0_24 = arith.constant 0 : index
    %41 = vector.load %arg15[%c0_23, %c0_24] : memref<10x384xbf16, #tpu.memory_space<vmem>>, vector<10x384xbf16>
    tpu.vector_store %arg15[%c0_23, %c0_24], %40 {strides = array<i32>} : memref<10x384xbf16, #tpu.memory_space<vmem>>, vector<10x384xbf16>,
    %c0_25 = arith.constant 0 : index
    %c0_26 = arith.constant 0 : index
    %42 = vector.load %arg15[%c0_25, %c0_26] : memref<10x384xbf16, #tpu.memory_space<vmem>>, vector<10x384xbf16>
    %c0_27 = arith.constant 0 : index
    %c0_28 = arith.constant 0 : index
    %43 = vector.load %arg6[%c0_27, %c0_28] : memref<384x256xbf16, #tpu.memory_space<vmem>>, vector<384x256xbf16>
    %cst_29 = arith.constant dense<0.000000e+00> : vector<10x256xf32>
    %44 = tpu.matmul %42, %43, %cst_29 {dimension_numbers = #tpu.dot_dimension_numbers<[1], [0], [0], [1], [0, 0, 1, 1], [], []>} : vector<10x384xbf16>, vector<384x256xbf16>, vector<10x256xf32> -> vector<10x256xf32>
    %c0_30 = arith.constant 0 : index
    %c0_31 = arith.constant 0 : index
    %45 = vector.load %arg7[%c0_30, %c0_31] : memref<1x256xf32, #tpu.memory_space<vmem>>, vector<1x256xf32>
    %46 = vector.broadcast %45 : vector<1x256xf32> to vector<10x256xf32>
    %47 = arith.addf %44, %46 : vector<10x256xf32>
    %cst_32 = arith.constant 0.000000e+00 : f32
    %48 = vector.broadcast %cst_32 : f32 to vector<10x256xf32>
    %49 = arith.cmpf ogt, %47, %48 : vector<10x256xf32>
    %cst_33 = arith.constant 2.500000e-01 : f32
    %50 = vector.broadcast %cst_33 : f32 to vector<10x256xf32>
    %51 = arith.mulf %50, %47 : vector<10x256xf32>
    %52 = arith.select %49, %47, %51 : vector<10x256xi1>, vector<10x256xf32>
    %53 = arith.truncf %52 : vector<10x256xf32> to vector<10x256xbf16>
    %54 = vector.extract_strided_slice %53 {offsets = [0, 0], sizes = [8, 256], strides = [1, 1]} : vector<10x256xbf16> to vector<8x256xbf16>
    %55 = vector.extract_strided_slice %53 {offsets = [1, 0], sizes = [8, 256], strides = [1, 1]} : vector<10x256xbf16> to vector<8x256xbf16>
    %56 = vector.extract_strided_slice %53 {offsets = [2, 0], sizes = [8, 256], strides = [1, 1]} : vector<10x256xbf16> to vector<8x256xbf16>
    %57 = tpu.concatenate %54, %55, %56 in 1 : vector<8x256xbf16>, vector<8x256xbf16>, vector<8x256xbf16> -> vector<8x768xbf16>
    %c0_34 = arith.constant 0 : index
    %c0_35 = arith.constant 0 : index
    %58 = vector.load %arg16[%c0_34, %c0_35] : memref<8x768xbf16, #tpu.memory_space<vmem>>, vector<8x768xbf16>
    tpu.vector_store %arg16[%c0_34, %c0_35], %57 {strides = array<i32>} : memref<8x768xbf16, #tpu.memory_space<vmem>>, vector<8x768xbf16>,
    %c0_36 = arith.constant 0 : index
    %c0_37 = arith.constant 0 : index
    %59 = vector.load %arg16[%c0_36, %c0_37] : memref<8x768xbf16, #tpu.memory_space<vmem>>, vector<8x768xbf16>
    %c0_38 = arith.constant 0 : index
    %c0_39 = arith.constant 0 : index
    %60 = vector.load %arg8[%c0_38, %c0_39] : memref<768x256xbf16, #tpu.memory_space<vmem>>, vector<768x256xbf16>
    %cst_40 = arith.constant dense<0.000000e+00> : vector<8x256xf32>
    %61 = tpu.matmul %59, %60, %cst_40 {dimension_numbers = #tpu.dot_dimension_numbers<[1], [0], [0], [1], [0, 0, 1, 1], [], []>} : vector<8x768xbf16>, vector<768x256xbf16>, vector<8x256xf32> -> vector<8x256xf32>
    %c0_41 = arith.constant 0 : index
    %c0_42 = arith.constant 0 : index
    %62 = vector.load %arg9[%c0_41, %c0_42] : memref<1x256xf32, #tpu.memory_space<vmem>>, vector<1x256xf32>
    %63 = vector.broadcast %62 : vector<1x256xf32> to vector<8x256xf32>
    %64 = arith.addf %61, %63 : vector<8x256xf32>
    %cst_43 = arith.constant 0.000000e+00 : f32
    %65 = vector.broadcast %cst_43 : f32 to vector<8x256xf32>
    %66 = arith.cmpf ogt, %64, %65 : vector<8x256xf32>
    %cst_44 = arith.constant 2.500000e-01 : f32
    %67 = vector.broadcast %cst_44 : f32 to vector<8x256xf32>
    %68 = arith.mulf %67, %64 : vector<8x256xf32>
    %69 = arith.select %66, %64, %68 : vector<8x256xi1>, vector<8x256xf32>
    %70 = arith.truncf %69 : vector<8x256xf32> to vector<8x256xbf16>
    %71 = vector.extract_strided_slice %70 {offsets = [0, 0], sizes = [6, 256], strides = [1, 1]} : vector<8x256xbf16> to vector<6x256xbf16>
    %72 = vector.extract_strided_slice %70 {offsets = [1, 0], sizes = [6, 256], strides = [1, 1]} : vector<8x256xbf16> to vector<6x256xbf16>
    %73 = vector.extract_strided_slice %70 {offsets = [2, 0], sizes = [6, 256], strides = [1, 1]} : vector<8x256xbf16> to vector<6x256xbf16>
    %74 = tpu.concatenate %71, %72, %73 in 1 : vector<6x256xbf16>, vector<6x256xbf16>, vector<6x256xbf16> -> vector<6x768xbf16>
    %c0_45 = arith.constant 0 : index
    %c0_46 = arith.constant 0 : index
    %75 = vector.load %arg17[%c0_45, %c0_46] : memref<6x768xbf16, #tpu.memory_space<vmem>>, vector<6x768xbf16>
    tpu.vector_store %arg17[%c0_45, %c0_46], %74 {strides = array<i32>} : memref<6x768xbf16, #tpu.memory_space<vmem>>, vector<6x768xbf16>,
    %c0_47 = arith.constant 0 : index
    %c0_48 = arith.constant 0 : index
    %76 = vector.load %arg17[%c0_47, %c0_48] : memref<6x768xbf16, #tpu.memory_space<vmem>>, vector<6x768xbf16>
    %c0_49 = arith.constant 0 : index
    %c0_50 = arith.constant 0 : index
    %77 = vector.load %arg10[%c0_49, %c0_50] : memref<768x24xbf16, #tpu.memory_space<vmem>>, vector<768x24xbf16>
    %cst_51 = arith.constant dense<0.000000e+00> : vector<6x24xf32>
    %78 = tpu.matmul %76, %77, %cst_51 {dimension_numbers = #tpu.dot_dimension_numbers<[1], [0], [0], [1], [0, 0, 1, 1], [], []>} : vector<6x768xbf16>, vector<768x24xbf16>, vector<6x24xf32> -> vector<6x24xf32>
    %c0_52 = arith.constant 0 : index
    %c0_53 = arith.constant 0 : index
    %79 = vector.load %arg11[%c0_52, %c0_53] : memref<1x24xf32, #tpu.memory_space<vmem>>, vector<1x24xf32>
    %80 = vector.broadcast %79 : vector<1x24xf32> to vector<6x24xf32>
    %81 = arith.addf %78, %80 : vector<6x24xf32>
    %82 = math.tanh %81 : vector<6x24xf32>
    %c0_54 = arith.constant 0 : index
    %c0_55 = arith.constant 0 : index
    %c0_56 = arith.constant 0 : index
    %83 = vector.load %arg12[%c0_54, %c0_55, %c0_56] : memref<1x6x24xf32, #tpu.memory_space<vmem>>, vector<1x6x24xf32>
    %84 = vector.shape_cast %83 : vector<1x6x24xf32> to vector<6x24xf32>
    %85 = vector.shape_cast %82 : vector<6x24xf32> to vector<1x6x24xf32>
    tpu.vector_store %arg12[%c0_54, %c0_55, %c0_56], %85 {strides = array<i32>} : memref<1x6x24xf32, #tpu.memory_space<vmem>>, vector<1x6x24xf32>,
    return
  }
  func.func @transform_0(%arg0: i32) -> (i32, i32, i32) {
    %c0_i32 = arith.constant 0 : i32
    %c0_i32_0 = arith.constant 0 : i32
    %c0_i32_1 = arith.constant 0 : i32
    return %arg0, %c0_i32, %c0_i32_0 : i32, i32, i32
  }
  func.func @transform_1(%arg0: i32) -> (i32, i32) {
    %c0_i32 = arith.constant 0 : i32
    %c0_i32_0 = arith.constant 0 : i32
    %c0_i32_1 = arith.constant 0 : i32
    return %c0_i32, %c0_i32_0 : i32, i32
  }
  func.func @transform_2(%arg0: i32) -> (i32, i32) {
    %c0_i32 = arith.constant 0 : i32
    %c0_i32_0 = arith.constant 0 : i32
    %c0_i32_1 = arith.constant 0 : i32
    return %c0_i32, %c0_i32_0 : i32, i32
  }
  func.func @transform_3(%arg0: i32) -> (i32, i32) {
    %c0_i32 = arith.constant 0 : i32
    %c0_i32_0 = arith.constant 0 : i32
    %c0_i32_1 = arith.constant 0 : i32
    return %c0_i32, %c0_i32_0 : i32, i32
  }
  func.func @transform_4(%arg0: i32) -> (i32, i32) {
    %c0_i32 = arith.constant 0 : i32
    %c0_i32_0 = arith.constant 0 : i32
    %c0_i32_1 = arith.constant 0 : i32
    return %c0_i32, %c0_i32_0 : i32, i32
  }
  func.func @transform_5(%arg0: i32) -> (i32, i32) {
    %c0_i32 = arith.constant 0 : i32
    %c0_i32_0 = arith.constant 0 : i32
    %c0_i32_1 = arith.constant 0 : i32
    return %c0_i32, %c0_i32_0 : i32, i32
  }
  func.func @transform_6(%arg0: i32) -> (i32, i32) {
    %c0_i32 = arith.constant 0 : i32
    %c0_i32_0 = arith.constant 0 : i32
    %c0_i32_1 = arith.constant 0 : i32
    return %c0_i32, %c0_i32_0 : i32, i32
  }
  func.func @transform_7(%arg0: i32) -> (i32, i32) {
    %c0_i32 = arith.constant 0 : i32
    %c0_i32_0 = arith.constant 0 : i32
    %c0_i32_1 = arith.constant 0 : i32
    return %c0_i32, %c0_i32_0 : i32, i32
  }
  func.func @transform_8(%arg0: i32) -> (i32, i32) {
    %c0_i32 = arith.constant 0 : i32
    %c0_i32_0 = arith.constant 0 : i32
    %c0_i32_1 = arith.constant 0 : i32
    return %c0_i32, %c0_i32_0 : i32, i32
  }
  func.func @transform_9(%arg0: i32) -> (i32, i32) {
    %c0_i32 = arith.constant 0 : i32
    %c0_i32_0 = arith.constant 0 : i32
    %c0_i32_1 = arith.constant 0 : i32
    return %c0_i32, %c0_i32_0 : i32, i32
  }
  func.func @transform_10(%arg0: i32) -> (i32, i32) {
    %c0_i32 = arith.constant 0 : i32
    %c0_i32_0 = arith.constant 0 : i32
    %c0_i32_1 = arith.constant 0 : i32
    return %c0_i32, %c0_i32_0 : i32, i32
  }
  func.func @transform_11(%arg0: i32) -> (i32, i32, i32) {
    %c0_i32 = arith.constant 0 : i32
    %c0_i32_0 = arith.constant 0 : i32
    %c0_i32_1 = arith.constant 0 : i32
    return %arg0, %c0_i32, %c0_i32_0 : i32, i32, i32
  }
}

</mosaic_0001>

<bundles_post_ra>
// kernel: convnet_forward.1
= control target key start
LH: loop header
LB: loop body
LE: loop exit
PB: predicated region body
PF: predicated region fallthrough
CT: control target
= control target key end

     0   :  { %16 = vsyncpa [#allocation8], 0  ;;  %s4564_s0 = inlined_call_operand.vmem [shape: f32[2,16,128], index: 0, kind: input, shape index: {}]   ;;  %s4565_s1 = inlined_call_operand.hbm [shape: bf16[384,128], index: 1, kind: input, shape index: {}]   ;;  %s4566_s2 = inlined_call_operand.vmem [shape: f32[1,128], index: 2, kind: input, shape index: {}]   ;;  %s4567_s3 = inlined_call_operand.hbm [shape: bf16[384,128], index: 3, kind: input, shape index: {}]   ;;  %s4568_s4 = inlined_call_operand.vmem [shape: f32[1,128], index: 4, kind: input, shape index: {}]   ;;  %s4569_s5 = inlined_call_operand.hbm [shape: bf16[384,256], index: 5, kind: input, shape index: {}]   ;;  %s4570_s6 = inlined_call_operand.vmem [shape: f32[1,256], index: 6, kind: input, shape index: {}]   ;;  %s4571_s7 = inlined_call_operand.vmem [shape: bf16[768,256], index: 7, kind: input, shape index: {}]   ;;  %s4572_s8 = inlined_call_operand.vmem [shape: f32[1,256], index: 8, kind: input, shape index: {}]   ;;  %s4573_s9 = inlined_call_operand.vmem [shape: bf16[768,24], index: 9, kind: input, shape index: {}]   ;;  %s4574_s10 = inlined_call_operand.vmem [shape: f32[1,24], index: 10, kind: input, shape index: {}]   ;;  %s4575_s11 = inlined_call_operand.vmem [shape: f32[2,6,24], index: 11, kind: output, shape index: {}]  }
   0x1   :  { %17 = vsyncpa [#allocation10], 0  ;;  %s3992_s17 = smov 0  }
   0x2 LB: > { %s3998_s18 = sadd.s32 4294967295, %s3920_s17   ;;  %p2983_p0 = scmp.ge.s32.totalorder %s3920_s17, 1  ;;  %s3920_s17 = sphi %s3992_s17, %s23_s17  }
   0x3   : > { %p290_p1 = scmp.lt.s32.totalorder %s3920_s17, 3  ;;  %p3478_p2 = scmp.eq.s32.totalorder %s3998_s18, 0 }
   0x4   : > { %s3922_s20 = smov [#allocation9]   ;;  %s3923_s22 = smov [#allocation7]  }
   0x5   : > { %p4003_p3 = pnand %p2983_p0, %p290_p1  ;;  %s318_s21 = sshll.u32 %s3922_s20, 4  ;;  %s319_s21 = int_to_ptr.vmem [resolvable:$true] %s318_s21 }
   0x6   : > { %s302_s23 = sshll.u32 %s3923_s22, 4  ;;  %s3924_s25 = smov [#allocation11]   ;;  %s4009_s23 = int_to_ptr.vmem [resolvable:$true] %s302_s23 }
   0x7   : > { %p3468_p4 = pneg %p4003_p3  ;;  %s334_s26 = sshll.u32 %s3924_s25, 4  ;;  %s4017_s26 = int_to_ptr.vmem [resolvable:$true] %s334_s26 }
   0x8   : > { %s3839_s27 = scalar_lea.vmem %s319_s21, 3072  ;;  %p3847_p10 = scmp.lt.s32.totalorder %s319_s21, %s319_s21 }
   0x9   : > { %p4013_p5 = pnand %p3478_p2, %p3468_p4  ;;  %p3840_p7 = scmp.ne.s32.totalorder %s319_s21, %s3839_s27 }
   0xa   : > { %p3848_p11 = scmp.lt.s32.totalorder %s3839_s27, %s3839_s27 }
   0xb   : > { %p3830_p6 = pneg %p4013_p5 }
   0xc   : > { %p3849_p12 = por %p3848_p11, %p3847_p10 }
   0xd   : > { %p3842_p8 = pnand %p3840_p7, %p3830_p6 }
   0xf   : > { %p3843_p9 = pneg %p3842_p8 }
  0x11   : > { %p3850_p13 = pnand %p3849_p12, %p3843_p9 }
  0x13   : > { %3853 = shalt.err (!%p3850_p13)
}
  0x14   : > { %s3925_s28 = smov 64   ;;  %s3926_s29 = smov 4  }
  0x15   : > { %3474 = dma.hbm_to_vmem [thread:$0]  (!%p4013_p5), %s4567_s3, 3072, %s319_s21, [#allocation10], %s3925_s28, %s3925_s28, %s3926_s29  }
  0x16   : > { %s3865_s13 = scalar_lea.vmem %s4009_s23, 3072  ;;  %p3873_p7 = scmp.lt.s32.totalorder %s4009_s23, %s4009_s23 }
  0x17   : > { %p3866_p0 = scmp.ne.s32.totalorder %s4009_s23, %s3865_s13  ;;  %p3874_p8 = scmp.lt.s32.totalorder %s3865_s13, %s3865_s13 }
  0x19   : > { %p3868_p1 = pnand %p3866_p0, %p3830_p6  ;;  %p3875_p9 = por %p3874_p8, %p3873_p7 }
  0x1b   : > { %p3869_p4 = pneg %p3868_p1 }
  0x1d   : > { %p3876_p10 = pnand %p3875_p9, %p3869_p4 }
  0x1f   : > { %3879 = shalt.err (!%p3876_p10)
}
  0x20   : > { %3471 = dma.hbm_to_vmem [thread:$0]  (!%p4013_p5), %s4565_s1, 3072, %s4009_s23, [#allocation8], %s3925_s28, %s3925_s28, %s3926_s29  }
  0x21   : > { %s3891_s16 = scalar_lea.vmem %s4017_s26, 6144  ;;  %p3899_p0 = scmp.lt.s32.totalorder %s4017_s26, %s4017_s26 }
  0x22   : > { %p3892_p11 = scmp.ne.s32.totalorder %s4017_s26, %s3891_s16  ;;  %p3900_p1 = scmp.lt.s32.totalorder %s3891_s16, %s3891_s16 }
  0x24   : > { %p3894_p12 = pnand %p3892_p11, %p3830_p6  ;;  %p3901_p4 = por %p3900_p1, %p3899_p0 }
  0x26   : > { %p3895_p13 = pneg %p3894_p12 }
  0x28   : > { %p3902_p7 = pnand %p3901_p4, %p3895_p13 }
  0x2a   : > { %3905 = shalt.err (!%p3902_p7)
}
  0x2b   : > { %s3927_s20 = smov 128   ;;  %s3928_s21 = smov 8  }
  0x2c   : > { %3477 = dma.hbm_to_vmem [thread:$0]  (!%p4013_p5), %s4569_s5, 6144, %s4017_s26, [#allocation10], %s3927_s20, %s3927_s20, %s3928_s21  }
  0x2d   : > { %373 = sbr.rel (%p4003_p3) target bundleno = 1275 (0x4fb), region = 64 }
  0x32   : > { %3911 = dma.done.wait (%p3478_p2), [#allocation8], 3072  }
  0x33   : > { %3913 = vsyncadd (%p3478_p2), [#allocation8], 4294964224 }
  0x34   : > { %3915 = dma.done.wait (%p3478_p2), [#allocation10], 9216  }
  0x35   : > { %3917 = vsyncadd (%p3478_p2), [#allocation10], 4294958080  ;;  %v3929_v0 = vmov 0.0   ;;  %vm3930_vm0 = vmmov 0   ;;  %v3502_v1 = vld [vmem:[#allocation7 + $0x78] sm:$0xff]   ;;  %v3505_v4 = vld [vmem:[#allocation7 + $0x70] sm:$0xff]  }
  0x36   : > { %3416 = vmatprep.subr.bf16.mxu1 %v3929_v0  ;;  %3432 = vmatprep.mubr.msk.bf16.mxu1 %vm3930_vm0, %v3929_v0  ;;  %v3503_v2 = vld [vmem:[#allocation7 + $0x38] sm:$0xff]   ;;  %v3506_v5 = vld [vmem:[#allocation7 + $0x30] sm:$0xff]   ;;  %v3508_v7 = vld [vmem:[#allocation7 + $0x68] sm:$0xff]   ;;  %p420_p2 = scmp.lt.s32.totalorder %s3998_s18, 1  ;;  %vm2895_vm11 = vcmask 193536  }
  0x37   : > { %3288 = vmatprep.subr.bf16.mxu0 %v3502_v1  ;;  %v3504_v3 = vld [vmem:[#allocation7 + $0xb8] sm:$0xff]   ;;  %v3507_v6 = vld [vmem:[#allocation7 + $0xb0] sm:$0xff]   ;;  %v3509_v8 = vld [vmem:[#allocation7 + $0x28] sm:$0xff]  }
  0x38   : > { %3289 = vmatpush3.bf16.msra.mxu0 %v3503_v2  ;;  %3417 = vmatpush3.bf16.msra.mxu1 %v3504_v3  ;;  %v3510_v9 = vld [vmem:[#allocation7 + $0xa8] sm:$0xff]   ;;  %v3511_v10 = vld [vmem:[#allocation7 + $0x60] sm:$0xff]   ;;  %v3514_v13 = vld [vmem:[#allocation7 + $0x58] sm:$0xff]   ;;  %s4579_s18 = smov (!%p420_p2, %s3998_s18), 1 }
  0x39   : > { %3290 = vmatprep.subr.bf16.mxu0 %v3505_v4  ;;  %3418 = vmatprep.subr.bf16.mxu1 %v3929_v0  ;;  %v3512_v11 = vld [vmem:[#allocation7 + $0x20] sm:$0xff]   ;;  %v3515_v14 = vld [vmem:[#allocation7 + $0x18] sm:$0xff]   ;;  %v3517_v16 = vld [vmem:[#allocation7 + $0x50] sm:$0xff]   ;;  %s3279_s19 = sshll.u32 %s4579_s18, 4  ;;  %s2994_s20 = sshll.u32 %s4579_s18, 3 }
  0x3a   : > { %v3513_v12 = vld [vmem:[#allocation7 + $0xa0] sm:$0xff]   ;;  %v3516_v15 = vld [vmem:[#allocation7 + $0x98] sm:$0xff]   ;;  %v3518_v17 = vld [vmem:[#allocation7 + $0x10] sm:$0xff]   ;;  %s424_s26 = scalar_lea.vmem %s4564_s0, %s3279_s19  ;;  %s428_s25 = scalar_lea.vmem %s4575_s11, %s2994_s20 }
  0x3b   : > { %v3519_v18 = vld [vmem:[#allocation7 + $0x90] sm:$0xff]   ;;  %v3520_v19 = vld [vmem:[#allocation7 + $0x48] sm:$0xff]   ;;  %v3523_v22 = vld [vmem:[#allocation7 + $0x40] sm:$0xff]  }
  0x3c   : > { %3291 = vmatpush3.bf16.msra.mxu0 %v3506_v5  ;;  %3419 = vmatpush3.bf16.msra.mxu1 %v3507_v6  ;;  %v3521_v20 = vld [vmem:[#allocation7 + $0x8] sm:$0xff]   ;;  %v430_v23 = vld [vmem:[%s424_s26] sm:$0xff]  ;;  %v3527_v41 = vld [vmem:[#allocation9 + $0xb8] sm:$0xff]  }
  0x3d   : > { %3292 = vmatprep.subr.bf16.mxu0 %v3508_v7  ;;  %3420 = vmatprep.subr.bf16.mxu1 %v3929_v0  ;;  %v3522_v21 = vld [vmem:[#allocation7 + $0x88] sm:$0xff]   ;;  %v3524_v25 = vld [vmem:[#allocation7] sm:$0xff]   ;;  %v3529_v42 = vld [vmem:[#allocation9 + $0xb0] sm:$0xff]  }
  0x3e   : > { %v431_v24 = vld [vmem:[%s424_s26 + $0x8] sm:$0xff]  ;;  %v3525_v27 = vld [vmem:[#allocation7 + $0x80] sm:$0xff]   ;;  %v3528_v43 = vld [vmem:[#allocation9 + $0x78] sm:$0xff]  }
  0x3f   : > { %v432_v26 = vpack.c.bf16 %v431_v24, %v430_v23  ;;  %v3530_v44 = vld [vmem:[#allocation9 + $0x38] sm:$0xff]   ;;  %v3532_v45 = vld [vmem:[#allocation9 + $0xa8] sm:$0xff]   ;;  %v3531_v46 = vld [vmem:[#allocation9 + $0x70] sm:$0xff]  }
  0x40   : > { %3293 = vmatpush3.bf16.msra.mxu0 %v3509_v8  ;;  %3421 = vmatpush3.bf16.msra.mxu1 %v3510_v9  ;;  %v3533_v47 = vld [vmem:[#allocation9 + $0x30] sm:$0xff]   ;;  %v3535_v48 = vld [vmem:[#allocation9 + $0xa0] sm:$0xff]   ;;  %v3534_v49 = vld [vmem:[#allocation9 + $0x68] sm:$0xff]  }
  0x41   : > { %3294 = vmatprep.subr.bf16.mxu0 %v3511_v10  ;;  %3422 = vmatprep.subr.bf16.mxu1 %v3929_v0  ;;  %v434_v28 = vshrl.u32 %v432_v26, 16  ;;  %v436_v29 = vshll.u32 %v432_v26, 16  ;;  %v441_v30 = vrot.slane %v432_v26, 1  ;;  %v3536_v50 = vld [vmem:[#allocation9 + $0x28] sm:$0xff]   ;;  %v3538_v51 = vld [vmem:[#allocation9 + $0x98] sm:$0xff]   ;;  %v3537_v52 = vld [vmem:[#allocation9 + $0x60] sm:$0xff]  }
  0x42   : > { %v3539_v53 = vld [vmem:[#allocation9 + $0x20] sm:$0xff]   ;;  %v3541_v54 = vld [vmem:[#allocation9 + $0x90] sm:$0xff]   ;;  %v3540_v55 = vld [vmem:[#allocation9 + $0x58] sm:$0xff]  }
  0x43   : > { %v438_v31 = vrot.slane %v436_v29, 1  ;;  %v2996_v32 = vcombine.low %v441_v30, %v441_v30  ;;  %v2998_v33 = vcombine.high %v441_v30, %v441_v30  ;;  %v3542_v56 = vld [vmem:[#allocation9 + $0x18] sm:$0xff]   ;;  %v3544_v57 = vld [vmem:[#allocation9 + $0x88] sm:$0xff]   ;;  %v3543_v58 = vld [vmem:[#allocation9 + $0x50] sm:$0xff]  }
  0x44   : > { %3295 = vmatpush3.bf16.msra.mxu0 %v3512_v11  ;;  %3423 = vmatpush3.bf16.msra.mxu1 %v3513_v12  ;;  %v3545_v59 = vld [vmem:[#allocation9 + $0x10] sm:$0xff]   ;;  %v3546_v60 = vld [vmem:[#allocation9 + $0x48] sm:$0xff]   ;;  %v3547_v61 = vld [vmem:[#allocation9 + $0x80] sm:$0xff]  }
  0x45   : > { %3296 = vmatprep.subr.bf16.mxu0 %v3514_v13  ;;  %3424 = vmatprep.subr.bf16.mxu1 %v3929_v0  ;;  %v439_v34 = vor.u32 %v438_v31, %v434_v28  ;;  %457 = vst [vmem:[#allocation2 + $0x8] sm:$0xf] %v2996_v32  ;;  %459 = vst [vmem:[#allocation2 + $0x14] sm:$0x7] %v2998_v33  ;;  %v3548_v62 = vld [vmem:[#allocation9 + $0x8] sm:$0xff]   ;;  %v3550_v63 = vld [vmem:[#allocation9 + $0x40] sm:$0xff]  }
  0x46   : > { %v3551_v1 = vld [vmem:[#allocation9] sm:$0xff]   ;;  %v3554_v2 = vld [vmem:[#allocation11 + $0x74] ss:$8 sps:$4 sm:$0xff]  }
  0x47   : > { %v2995_v35 = vcombine.low %v432_v26, %v439_v34  ;;  %v2997_v36 = vcombine.high %v432_v26, %v439_v34 }
  0x48   : > { %3297 = vmatpush3.bf16.msra.mxu0 %v3515_v14  ;;  %3425 = vmatpush3.bf16.msra.mxu1 %v3516_v15 }
  0x49   : > { %3298 = vmatprep.subr.bf16.mxu0 %v3517_v16  ;;  %3426 = vmatprep.subr.bf16.mxu1 %v3929_v0  ;;  %458 = vst [vmem:[#allocation2 + $0xc] sm:$0x77] %v2997_v36  ;;  %v3557_v36 = vld [vmem:[#allocation11 + $0x64] ss:$8 sps:$4 sm:$0xff]  }
  0x4c   : > { %3299 = vmatpush3.bf16.msra.mxu0 %v3518_v17  ;;  %3427 = vmatpush3.bf16.msra.mxu1 %v3519_v18  ;;  %v3526_v37 = vld [vmem:[#allocation2 + $0x8] ss:$12 sps:$4 sm:$0x7f]  }
  0x4d   : > { %3300 = vmatprep.subr.bf16.mxu0 %v3520_v19  ;;  %3428 = vmatprep.subr.bf16.mxu1 %v3929_v0 }
  0x50   : > { %3301 = vmatpush3.bf16.msra.mxu0 %v3521_v20  ;;  %3429 = vmatpush3.bf16.msra.mxu1 %v3522_v21  ;;  %v462_v38 = vld [vmem:[#allocation2 + $0xc] sm:$0x77] }
  0x51   : > { %3302 = vmatprep.subr.bf16.mxu0 %v3523_v22  ;;  %3430 = vmatprep.subr.bf16.mxu1 %v3929_v0  ;;  %v3825_v39 = vcombine.low %v432_v26, %v462_v38  ;;  %v3001_v40 = vcombine.high %v2995_v35, %v462_v38  ;;  %v3552_v35 = vld [vmem:[#allocation11 + $0x70] ss:$8 sps:$4 sm:$0xff]   ;;  %v3560_v38 = vld [vmem:[#allocation11 + $0x54] ss:$8 sps:$4 sm:$0xff]  }
  0x53   : > { %711 = vmatprep.mubr.bf16.mxu0 %v3001_v40  ;;  %v3563_v40 = vld [vmem:[#allocation11 + $0x44] ss:$8 sps:$4 sm:$0xff]  }
  0x54   : > { %3303 = vmatpush3.bf16.msra.mxu0 %v3524_v25  ;;  %3431 = vmatpush3.bf16.msra.mxu1 %v3525_v27 }
  0x55   : > { %3436 = vmatprep.subr.bf16.mxu1 %v3929_v0  ;;  %3319 = vmatprep.subr.bf16.mxu0 %v3528_v43  ;;  %v3564_v43 = vld [vmem:[#allocation11 + $0x30] ss:$8 sps:$4 sm:$0xff]  }
  0x57   : > { %3433 = vmatmul.mubr.bf16.vlgmr.msra.gmra.mxu1 %v3526_v37  ;;  %712 = vmatmul.mubr.bf16.vlgmr.msra.gmra.mxu0 %v3825_v39  ;;  %v3555_v37 = vld [vmem:[#allocation11 + $0x60] ss:$8 sps:$4 sm:$0xff]   ;;  %v3558_v39 = vld [vmem:[#allocation11 + $0x50] ss:$8 sps:$4 sm:$0xff]  }
  0x58   : > { %3452 = vmatprep.mubr.msk.bf16.mxu1 %vm3930_vm0, %v3929_v0  ;;  %3437 = vmatpush3.bf16.msra.mxu1 %v3527_v41  ;;  %v3561_v41 = vld [vmem:[#allocation11 + $0x40] ss:$8 sps:$4 sm:$0xff]  }
  0x59   : > { %3438 = vmatprep.subr.bf16.mxu1 %v3929_v0  ;;  %3320 = vmatpush3.bf16.msra.mxu0 %v3530_v44  ;;  %v3569_v44 = vld [vmem:[#allocation11 + $0x24] ss:$8 sps:$4 sm:$0xff]  }
  0x5a   : > { %3321 = vmatprep.subr.bf16.mxu0 %v3531_v46  ;;  %v3572_v46 = vld [vmem:[#allocation11 + $0x14] ss:$8 sps:$4 sm:$0xff]  }
  0x5c   : > { %3439 = vmatpush3.bf16.msra.mxu1 %v3529_v42  ;;  %v3566_v42 = vld [vmem:[#allocation11 + $0x34] ss:$8 sps:$4 sm:$0xff]  }
  0x5d   : > { %3440 = vmatprep.subr.bf16.mxu1 %v3929_v0  ;;  %3322 = vmatpush3.bf16.msra.mxu0 %v3533_v47  ;;  %v3570_v47 = vld [vmem:[#allocation11 + $0x10] ss:$8 sps:$4 sm:$0xff]  }
  0x5e   : > { %3323 = vmatprep.subr.bf16.mxu0 %v3534_v49  ;;  %v3573_v49 = vld [vmem:[#allocation11 + $0x170] ss:$8 sps:$4 sm:$0xff]  }
  0x60   : > { %3441 = vmatpush3.bf16.msra.mxu1 %v3532_v45  ;;  %v3567_v45 = vld [vmem:[#allocation11 + $0x20] ss:$8 sps:$4 sm:$0xff]  }
  0x61   : > { %3442 = vmatprep.subr.bf16.mxu1 %v3929_v0  ;;  %3324 = vmatpush3.bf16.msra.mxu0 %v3536_v50  ;;  %v3578_v50 = vld [vmem:[#allocation11 + $0x4] ss:$8 sps:$4 sm:$0xff]  }
  0x62   : > { %3325 = vmatprep.subr.bf16.mxu0 %v3537_v52  ;;  %v3581_v52 = vld [vmem:[#allocation11 + $0x164] ss:$8 sps:$4 sm:$0xff]  }
  0x64   : > { %3443 = vmatpush3.bf16.msra.mxu1 %v3535_v48  ;;  %v3575_v48 = vld [vmem:[#allocation11 + $0x174] ss:$8 sps:$4 sm:$0xff]  }
  0x65   : > { %3444 = vmatprep.subr.bf16.mxu1 %v3929_v0  ;;  %3326 = vmatpush3.bf16.msra.mxu0 %v3539_v53  ;;  %v3579_v53 = vld [vmem:[#allocation11 + $0x160] ss:$8 sps:$4 sm:$0xff]  }
  0x66   : > { %3327 = vmatprep.subr.bf16.mxu0 %v3540_v55  ;;  %v3582_v55 = vld [vmem:[#allocation11 + $0xf0] ss:$8 sps:$4 sm:$0xff]  }
  0x68   : > { %3445 = vmatpush3.bf16.msra.mxu1 %v3538_v51  ;;  %v3576_v51 = vld [vmem:[#allocation11] ss:$8 sps:$4 sm:$0xff]  }
  0x69   : > { %3446 = vmatprep.subr.bf16.mxu1 %v3929_v0  ;;  %3328 = vmatpush3.bf16.msra.mxu0 %v3542_v56  ;;  %v3587_v56 = vld [vmem:[#allocation11 + $0x154] ss:$8 sps:$4 sm:$0xff]  }
  0x6a   : > { %3329 = vmatprep.subr.bf16.mxu0 %v3543_v58  ;;  %v3590_v58 = vld [vmem:[#allocation11 + $0xe4] ss:$8 sps:$4 sm:$0xff]  }
  0x6c   : > { %3447 = vmatpush3.bf16.msra.mxu1 %v3541_v54  ;;  %v3584_v54 = vld [vmem:[#allocation11 + $0xf4] ss:$8 sps:$4 sm:$0xff]  }
  0x6d   : > { %3448 = vmatprep.subr.bf16.mxu1 %v3929_v0  ;;  %3330 = vmatpush3.bf16.msra.mxu0 %v3545_v59  ;;  %v3588_v59 = vld [vmem:[#allocation11 + $0xe0] ss:$8 sps:$4 sm:$0xff]  }
  0x6e   : > { %3331 = vmatprep.subr.bf16.mxu0 %v3546_v60  ;;  %v3593_v60 = vld [vmem:[#allocation11 + $0x144] ss:$8 sps:$4 sm:$0xff]  }
  0x70   : > { %3449 = vmatpush3.bf16.msra.mxu1 %v3544_v57  ;;  %v3585_v57 = vld [vmem:[#allocation11 + $0x150] ss:$8 sps:$4 sm:$0xff]  }
  0x71   : > { %3450 = vmatprep.subr.bf16.mxu1 %v3929_v0  ;;  %3332 = vmatpush3.bf16.msra.mxu0 %v3548_v62  ;;  %v2999_v0 = vld [vmem:[%s4566_s2] ss:$0 sm:$0xff]  ;;  %v3596_v62 = vld [vmem:[#allocation11 + $0xd4] ss:$8 sps:$4 sm:$0xff]  }
  0x72   : > { %3333 = vmatprep.subr.bf16.mxu0 %v3550_v63  ;;  %v3594_v63 = vld [vmem:[#allocation11 + $0xd0] ss:$8 sps:$4 sm:$0xff]  }
  0x74   : > { %3451 = vmatpush3.bf16.msra.mxu1 %v3547_v61  ;;  %v3591_v61 = vld [vmem:[#allocation11 + $0x140] ss:$8 sps:$4 sm:$0xff]  }
  0x75   : > { %3334 = vmatpush3.bf16.msra.mxu0 %v3551_v1  ;;  %1493 = vmatprep.subr.bf16.mxu1 %v3575_v48  ;;  %v3599_v1 = vld [vmem:[#allocation11 + $0x134] ss:$8 sps:$4 sm:$0xff]  }
  0x76   : > { %1450 = vmatprep.subr.bf16.mxu0 %v3554_v2  ;;  %v3597_v2 = vld [vmem:[#allocation11 + $0x130] ss:$8 sps:$4 sm:$0xff]  }
 0x117   : > { %v754_v3 = vpop.f32.mrf.mxu1  ;;  %v3304_v6 = vpop.f32.mrf.mxu0 }
 0x119   : > { %v3434_v4 = vpop.f32.mrf.mxu1  ;;  %v3305_v8 = vpop.f32.mrf.mxu0 }
 0x11a   : > { %v3306_v9 = vadd.f32 %v3305_v8, %v3304_v6  ;;  %v3600_v4 = vld [vmem:[#allocation11 + $0xc0] ss:$8 sps:$4 sm:$0xff]   ;;  %v3611_v8 = vld [vmem:[#allocation11 + $0x114] ss:$8 sps:$4 sm:$0xff]  }
 0x11b   : > { %v757_v5 = vpop.f32.mrf.mxu1  ;;  %v3307_v10 = vpop.f32.mrf.mxu0  ;;  %v3603_v6 = vld [vmem:[#allocation11 + $0x120] ss:$8 sps:$4 sm:$0xff]  }
 0x11c   : > { %v714_v11 = vadd.f32 %v3306_v9, %v2999_v0  ;;  %v3609_v9 = vld [vmem:[#allocation11 + $0x110] ss:$8 sps:$4 sm:$0xff]  }
 0x11d   : > { %v3435_v7 = vpop.f32.mrf.mxu1  ;;  %v3308_v12 = vpop.f32.mrf.mxu0 }
 0x11e   : > { %v755_v13 = vadd.f32 %v754_v3, %v714_v11  ;;  %v3309_v14 = vadd.f32 %v3308_v12, %v3307_v10  ;;  %v3602_v3 = vld [vmem:[#allocation11 + $0xc4] ss:$8 sps:$4 sm:$0xff]   ;;  %v3608_v7 = vld [vmem:[#allocation11 + $0xb4] ss:$8 sps:$4 sm:$0xff]   ;;  %v3612_v11 = vld [vmem:[#allocation11 + $0xa0] ss:$8 sps:$4 sm:$0xff]  }
 0x11f   : > { %v3614_v10 = vld [vmem:[#allocation11 + $0xa4] ss:$8 sps:$4 sm:$0xff]   ;;  %v3615_v12 = vld [vmem:[#allocation11 + $0x100] ss:$8 sps:$4 sm:$0xff]  }
 0x120   : > { %v717_v15 = vadd.f32 %v3309_v14, %v2999_v0  ;;  %v763_v16 = vmul.f32 0.25, %v755_v13  ;;  %vm761_vm1 = vcmp.gt.f32.partialorder %v755_v13, 0.0  ;;  %v3606_v0 = vld [vmem:[#allocation11 + $0xb0] ss:$8 sps:$4 sm:$0xff]  }
 0x121   : > { %v3618_v14 = vld [vmem:[#allocation11 + $0x90] ss:$8 sps:$4 sm:$0xff]  }
 0x122   : > { %v758_v17 = vadd.f32 %v757_v5, %v717_v15  ;;  %v765_v19 = vsel %vm761_vm1, %v755_v13, %v763_v16  ;;  %v3605_v5 = vld [vmem:[#allocation11 + $0x124] ss:$8 sps:$4 sm:$0xff]   ;;  %v3620_v15 = vld [vmem:[#allocation11 + $0x94] ss:$8 sps:$4 sm:$0xff]   ;;  %v3931_v16 = vmov 0  }
 0x123   : > { %v3617_v13 = vld [vmem:[#allocation11 + $0x104] ss:$8 sps:$4 sm:$0xff]  }
 0x124   : > { %vm762_vm2 = vcmp.gt.f32.partialorder %v758_v17, 0.0  ;;  %v764_v18 = vmul.f32 0.25, %v758_v17 }
 0x126   : > { %v766_v20 = vsel %vm762_vm2, %v758_v17, %v764_v18  ;;  %v3622_v17 = vld [vmem:[#allocation11 + $0x80] ss:$8 sps:$4 sm:$0xff]   ;;  %v3624_v18 = vld [vmem:[#allocation11 + $0x84] ss:$8 sps:$4 sm:$0xff]  }
 0x127   : > { %v767_v21 = vpack.c.bf16 %v766_v20, %v765_v19  ;;  %v3627_v19 = vld [vmem:[%s4571_s7 + $0x74] ss:$8 sps:$4 sm:$0xff]  }
 0x128   : > { %v3639_v20 = vld [vmem:[%s4571_s7 + $0x174] ss:$8 sps:$4 sm:$0xff]  }
 0x129   : > { %v771_v22 = vshll.u32 %v767_v21, 16  ;;  %v776_v23 = vrot.slane %v767_v21, 1  ;;  %v769_v24 = vshrl.u32 %v767_v21, 16 }
 0x12b   : > { %v773_v25 = vrot.slane %v771_v22, 1  ;;  %v3028_v26 = vcombine.low %v776_v23, %v776_v23  ;;  %v3030_v27 = vcombine.high %v776_v23, %v776_v23 }
 0x12d   : > { %v774_v28 = vor.u32 %v773_v25, %v769_v24  ;;  %792 = vst [vmem:[#allocation3 + $0x8] sm:$0xf] %v3028_v26  ;;  %794 = vst [vmem:[#allocation3 + $0x14] sm:$0x3] %v3030_v27  ;;  %v3031_v26 = vld [vmem:[%s4568_s4] ss:$0 sm:$0xff] }
 0x12f   : > { %v3027_v29 = vcombine.low %v767_v21, %v774_v28  ;;  %v3029_v30 = vcombine.high %v767_v21, %v774_v28 }
 0x131   : > { %793 = vst [vmem:[#allocation3 + $0xc] sm:$0x33] %v3029_v30 }
 0x134   : > { %v3549_v31 = vld [vmem:[#allocation3 + $0x8] ss:$12 sps:$4 sm:$0x3f]  }
 0x135   : > { %3453 = vmatmul.mubr.bf16.vlgmr.msra.gmra.mxu1 %v3549_v31 }
 0x136   : > { %1494 = vmatpush1.bf16.msra.mxu1 %v3573_v49  ;;  %1525 = vmatprep.mubr.bf16.mxu1 %v3931_v16  ;;  %v3658_v16 = vld [vmem:[%s4571_s7] ss:$8 sps:$4 sm:$0xff]  }
 0x137   : > { %1495 = vmatprep.subr.bf16.mxu1 %v3581_v52  ;;  %v3630_v52 = vld [vmem:[%s4571_s7 + $0x64] ss:$8 sps:$4 sm:$0xff]  }
 0x138   : > { %v797_v32 = vld [vmem:[#allocation3 + $0xc] sm:$0x33] }
 0x139   : > { %v3826_v33 = vcombine.low %v767_v21, %v797_v32  ;;  %v3033_v34 = vcombine.high %v3027_v29, %v797_v32 }
 0x13a   : > { %1496 = vmatpush1.bf16.msra.mxu1 %v3579_v53 }
 0x13b   : > { %1046 = vmatprep.mubr.bf16.mxu0 %v3033_v34  ;;  %1497 = vmatprep.subr.bf16.mxu1 %v3587_v56 }
 0x13c   : > { %1047 = vmatmul.mubr.bf16.vlgmr.msra.gmra.mxu0 %v3826_v33 }
 0x13d   : > { %1451 = vmatpush1.bf16.msra.mxu0 %v3552_v35 }
 0x13e   : > { %1452 = vmatprep.subr.bf16.mxu0 %v3557_v36  ;;  %1498 = vmatpush1.bf16.msra.mxu1 %v3585_v57  ;;  %v3633_v57 = vld [vmem:[%s4571_s7 + $0x54] ss:$8 sps:$4 sm:$0xff]  }
 0x13f   : > { %1499 = vmatprep.subr.bf16.mxu1 %v3593_v60  ;;  %v3631_v60 = vld [vmem:[%s4571_s7 + $0x50] ss:$8 sps:$4 sm:$0xff]  }
 0x141   : > { %1453 = vmatpush1.bf16.msra.mxu0 %v3555_v37 }
 0x142   : > { %1454 = vmatprep.subr.bf16.mxu0 %v3560_v38  ;;  %1500 = vmatpush1.bf16.msra.mxu1 %v3591_v61  ;;  %v3636_v61 = vld [vmem:[%s4571_s7 + $0x44] ss:$8 sps:$4 sm:$0xff]  }
 0x143   : > { %1501 = vmatprep.subr.bf16.mxu1 %v3599_v1  ;;  %v3634_v1 = vld [vmem:[%s4571_s7 + $0x40] ss:$8 sps:$4 sm:$0xff]  }
 0x145   : > { %1455 = vmatpush1.bf16.msra.mxu0 %v3558_v39 }
 0x146   : > { %1456 = vmatprep.subr.bf16.mxu0 %v3563_v40  ;;  %1502 = vmatpush1.bf16.msra.mxu1 %v3597_v2  ;;  %v3642_v2 = vld [vmem:[%s4571_s7 + $0x34] ss:$8 sps:$4 sm:$0xff]  }
 0x147   : > { %1503 = vmatprep.subr.bf16.mxu1 %v3605_v5  ;;  %v3640_v5 = vld [vmem:[%s4571_s7 + $0x30] ss:$8 sps:$4 sm:$0xff]  }
 0x149   : > { %1457 = vmatpush1.bf16.msra.mxu0 %v3561_v41 }
 0x14a   : > { %1458 = vmatprep.subr.bf16.mxu0 %v3566_v42  ;;  %1504 = vmatpush1.bf16.msra.mxu1 %v3603_v6  ;;  %v3648_v6 = vld [vmem:[%s4571_s7 + $0x24] ss:$8 sps:$4 sm:$0xff]  }
 0x14b   : > { %1505 = vmatprep.subr.bf16.mxu1 %v3611_v8  ;;  %v3646_v8 = vld [vmem:[%s4571_s7 + $0x20] ss:$8 sps:$4 sm:$0xff]  }
 0x14d   : > { %1459 = vmatpush1.bf16.msra.mxu0 %v3564_v43 }
 0x14e   : > { %1460 = vmatprep.subr.bf16.mxu0 %v3569_v44  ;;  %1506 = vmatpush1.bf16.msra.mxu1 %v3609_v9  ;;  %v3654_v9 = vld [vmem:[%s4571_s7 + $0x14] ss:$8 sps:$4 sm:$0xff]  }
 0x14f   : > { %1507 = vmatprep.subr.bf16.mxu1 %v3617_v13  ;;  %v3660_v13 = vld [vmem:[%s4571_s7 + $0x4] ss:$8 sps:$4 sm:$0xff]  }
 0x151   : > { %1461 = vmatpush1.bf16.msra.mxu0 %v3567_v45 }
 0x152   : > { %1462 = vmatprep.subr.bf16.mxu0 %v3572_v46  ;;  %1508 = vmatpush1.bf16.msra.mxu1 %v3615_v12  ;;  %v3652_v12 = vld [vmem:[%s4571_s7 + $0x10] ss:$8 sps:$4 sm:$0xff]  }
 0x153   : > { %2195 = vmatprep.subr.bf16.mxu1 %v3627_v19  ;;  %v3681_v19 = vld [vmem:[%s4571_s7 + $0x104] ss:$8 sps:$4 sm:$0xff]  }
 0x155   : > { %1463 = vmatpush1.bf16.msra.mxu0 %v3570_v47 }
 0x156   : > { %1464 = vmatprep.subr.bf16.mxu0 %v3578_v50  ;;  %v3625_v50 = vld [vmem:[%s4571_s7 + $0x70] ss:$8 sps:$4 sm:$0xff]  }
 0x159   : > { %1465 = vmatpush1.bf16.msra.mxu0 %v3576_v51 }
 0x15a   : > { %1466 = vmatprep.subr.bf16.mxu0 %v3584_v54  ;;  %v3628_v54 = vld [vmem:[%s4571_s7 + $0x60] ss:$8 sps:$4 sm:$0xff]  }
 0x15d   : > { %1467 = vmatpush2.bf16.msra.mxu0 %v3582_v55 }
 0x15e   : > { %1468 = vmatprep.subr.bf16.mxu0 %v3590_v58  ;;  %v3637_v58 = vld [vmem:[%s4571_s7 + $0x170] ss:$8 sps:$4 sm:$0xff]  }
 0x161   : > { %1469 = vmatpush2.bf16.msra.mxu0 %v3588_v59  ;;  %v3645_v59 = vld [vmem:[%s4571_s7 + $0x164] ss:$8 sps:$4 sm:$0xff]  }
 0x162   : > { %1470 = vmatprep.subr.bf16.mxu0 %v3596_v62  ;;  %v3643_v62 = vld [vmem:[%s4571_s7 + $0x160] ss:$8 sps:$4 sm:$0xff]  }
 0x165   : > { %1471 = vmatpush2.bf16.msra.mxu0 %v3594_v63  ;;  %v3651_v63 = vld [vmem:[%s4571_s7 + $0x154] ss:$8 sps:$4 sm:$0xff]  }
 0x166   : > { %1472 = vmatprep.subr.bf16.mxu0 %v3602_v3  ;;  %v3649_v3 = vld [vmem:[%s4571_s7 + $0x150] ss:$8 sps:$4 sm:$0xff]  }
 0x169   : > { %1473 = vmatpush2.bf16.msra.mxu0 %v3600_v4  ;;  %v3657_v4 = vld [vmem:[%s4571_s7 + $0x144] ss:$8 sps:$4 sm:$0xff]  }
 0x16a   : > { %1474 = vmatprep.subr.bf16.mxu0 %v3608_v7  ;;  %v3655_v7 = vld [vmem:[%s4571_s7 + $0x140] ss:$8 sps:$4 sm:$0xff]  }
 0x16d   : > { %1475 = vmatpush2.bf16.msra.mxu0 %v3606_v0  ;;  %v3663_v0 = vld [vmem:[%s4571_s7 + $0x134] ss:$8 sps:$4 sm:$0xff]  }
 0x16e   : > { %1476 = vmatprep.subr.bf16.mxu0 %v3614_v10  ;;  %v3661_v10 = vld [vmem:[%s4571_s7 + $0x130] ss:$8 sps:$4 sm:$0xff]  }
 0x171   : > { %1477 = vmatpush2.bf16.msra.mxu0 %v3612_v11  ;;  %v3669_v11 = vld [vmem:[%s4571_s7 + $0x124] ss:$8 sps:$4 sm:$0xff]  }
 0x172   : > { %1478 = vmatprep.subr.bf16.mxu0 %v3620_v15  ;;  %v3675_v15 = vld [vmem:[%s4571_s7 + $0x114] ss:$8 sps:$4 sm:$0xff]  }
 0x175   : > { %1479 = vmatpush2.bf16.msra.mxu0 %v3618_v14  ;;  %v3667_v14 = vld [vmem:[%s4571_s7 + $0x120] ss:$8 sps:$4 sm:$0xff]  }
 0x176   : > { %1480 = vmatprep.subr.bf16.mxu0 %v3624_v18  ;;  %v3673_v18 = vld [vmem:[%s4571_s7 + $0x110] ss:$8 sps:$4 sm:$0xff]  }
 0x179   : > { %1481 = vmatpush2.bf16.msra.mxu0 %v3622_v17  ;;  %v3666_v17 = vld [vmem:[%s4571_s7 + $0xf4] ss:$8 sps:$4 sm:$0xff]  }
 0x17a   : > { %2236 = vmatprep.subr.bf16.mxu0 %v3639_v20  ;;  %v3664_v20 = vld [vmem:[%s4571_s7 + $0xf0] ss:$8 sps:$4 sm:$0xff]  }
 0x1f5   : > { %v1089_v21 = vpop.f32.mrf.mxu1 }
 0x1f7   : > { %v3454_v22 = vpop.f32.mrf.mxu1 }
 0x1f8   : > { %v3679_v22 = vld [vmem:[%s4571_s7 + $0x100] ss:$8 sps:$4 sm:$0xff]  }
 0x1f9   : > { %v1092_v23 = vpop.f32.mrf.mxu1 }
 0x1fb   : > { %v3455_v25 = vpop.f32.mrf.mxu1 }
 0x1fc   : > { %v3335_v24 = vpop.f32.mrf.mxu0  ;;  %v3678_v25 = vld [vmem:[%s4571_s7 + $0xd4] ss:$8 sps:$4 sm:$0xff]  }
 0x1fe   : > { %v3336_v27 = vpop.f32.mrf.mxu0 }
 0x1ff   : > { %v3337_v28 = vadd.f32 %v3336_v27, %v3335_v24  ;;  %v3670_v24 = vld [vmem:[%s4571_s7 + $0xe0] ss:$8 sps:$4 sm:$0xff]   ;;  %v3676_v27 = vld [vmem:[%s4571_s7 + $0xd0] ss:$8 sps:$4 sm:$0xff]  }
 0x200   : > { %v3338_v29 = vpop.f32.mrf.mxu0 }
 0x201   : > { %v1049_v30 = vadd.f32 %v3337_v28, %v3031_v26  ;;  %v3684_v28 = vld [vmem:[%s4571_s7 + $0xc4] ss:$8 sps:$4 sm:$0xff]  }
 0x202   : > { %v3339_v31 = vpop.f32.mrf.mxu0 }
 0x203   : > { %v1090_v32 = vadd.f32 %v1089_v21, %v1049_v30  ;;  %v3340_v33 = vadd.f32 %v3339_v31, %v3338_v29  ;;  %v3672_v21 = vld [vmem:[%s4571_s7 + $0xe4] ss:$8 sps:$4 sm:$0xff]   ;;  %v3682_v29 = vld [vmem:[%s4571_s7 + $0xc0] ss:$8 sps:$4 sm:$0xff]   ;;  %v3688_v30 = vld [vmem:[%s4571_s7 + $0xb0] ss:$8 sps:$4 sm:$0xff]  }
 0x204   : > { %v3690_v31 = vld [vmem:[%s4571_s7 + $0xb4] ss:$8 sps:$4 sm:$0xff]  }
 0x205   : > { %v1052_v34 = vadd.f32 %v3340_v33, %v3031_v26  ;;  %v1098_v35 = vmul.f32 0.25, %v1090_v32  ;;  %vm1096_vm3 = vcmp.gt.f32.partialorder %v1090_v32, 0.0  ;;  %v3685_v26 = vld [vmem:[%s4571_s7 + $0x1f0] ss:$8 sps:$4 sm:$0xff]   ;;  %v3691_v33 = vld [vmem:[%s4571_s7 + $0x1e0] ss:$8 sps:$4 sm:$0xff]  }
 0x207   : > { %v1093_v36 = vadd.f32 %v1092_v23, %v1052_v34  ;;  %v1100_v38 = vsel %vm1096_vm3, %v1090_v32, %v1098_v35  ;;  %v3687_v23 = vld [vmem:[%s4571_s7 + $0x1f4] ss:$8 sps:$4 sm:$0xff]   ;;  %v3693_v32 = vld [vmem:[%s4571_s7 + $0x1e4] ss:$8 sps:$4 sm:$0xff]   ;;  %v3694_v35 = vld [vmem:[%s4571_s7 + $0xa0] ss:$8 sps:$4 sm:$0xff]  }
 0x208   : > { %v3696_v34 = vld [vmem:[%s4571_s7 + $0xa4] ss:$8 sps:$4 sm:$0xff]  }
 0x209   : > { %vm1097_vm4 = vcmp.gt.f32.partialorder %v1093_v36, 0.0  ;;  %v1099_v37 = vmul.f32 0.25, %v1093_v36 }
 0x20b   : > { %v1101_v39 = vsel %vm1097_vm4, %v1093_v36, %v1099_v37  ;;  %v3699_v36 = vld [vmem:[%s4571_s7 + $0x1d4] ss:$8 sps:$4 sm:$0xff]   ;;  %v3697_v37 = vld [vmem:[%s4571_s7 + $0x1d0] ss:$8 sps:$4 sm:$0xff]  }
 0x20c   : > { %v1102_v40 = vpack.c.bf16 %v1101_v39, %v1100_v38  ;;  %v3702_v38 = vld [vmem:[%s4571_s7 + $0x94] ss:$8 sps:$4 sm:$0xff]   ;;  %v3700_v39 = vld [vmem:[%s4571_s7 + $0x90] ss:$8 sps:$4 sm:$0xff]  }
 0x20e   : > { %v1106_v41 = vshll.u32 %v1102_v40, 16  ;;  %v1111_v42 = vrot.slane %v1102_v40, 1  ;;  %v1104_v43 = vshrl.u32 %v1102_v40, 16 }
 0x210   : > { %v1108_v44 = vrot.slane %v1106_v41, 1  ;;  %v3060_v45 = vcombine.low %v1111_v42, %v1111_v42  ;;  %v3062_v46 = vcombine.high %v1111_v42, %v1111_v42  ;;  %v3703_v41 = vld [vmem:[%s4571_s7 + $0x1c0] ss:$8 sps:$4 sm:$0xff]   ;;  %v3708_v42 = vld [vmem:[%s4571_s7 + $0x84] ss:$8 sps:$4 sm:$0xff]  }
 0x212   : > { %v1109_v47 = vor.u32 %v1108_v44, %v1104_v43  ;;  %1127 = vst [vmem:[#allocation4 + $0x8] sm:$0xf] %v3060_v45  ;;  %1129 = vst [vmem:[#allocation4 + $0x14] sm:$0x1] %v3062_v46  ;;  %v3706_v43 = vld [vmem:[%s4571_s7 + $0x80] ss:$8 sps:$4 sm:$0xff]  }
 0x213   : > { %v3711_v44 = vld [vmem:[%s4571_s7 + $0x1b4] ss:$8 sps:$4 sm:$0xff]   ;;  %v3709_v45 = vld [vmem:[%s4571_s7 + $0x1b0] ss:$8 sps:$4 sm:$0xff]  }
 0x214   : > { %v3059_v48 = vcombine.low %v1102_v40, %v1109_v47  ;;  %v3061_v49 = vcombine.high %v1102_v40, %v1109_v47  ;;  %v3714_v46 = vld [vmem:[%s4571_s7 + $0x274] ss:$8 sps:$4 sm:$0xff]   ;;  %v3717_v47 = vld [vmem:[%s4571_s7 + $0x1a4] ss:$8 sps:$4 sm:$0xff]  }
 0x216   : > { %1128 = vst [vmem:[#allocation4 + $0xc] sm:$0x11] %v3061_v49  ;;  %v3721_v49 = vld [vmem:[%s4571_s7 + $0x190] ss:$8 sps:$4 sm:$0xff]  }
 0x219   : > { %v3621_v51 = vld [vmem:[#allocation4 + $0x8] ss:$12 sps:$4 sm:$0x1f]  }
 0x21a   : > { %1526 = vmatmul.mubr.bf16.vlgmr.msra.gmra.mxu1 %v3621_v51  ;;  %v3729_v51 = vld [vmem:[%s4571_s7 + $0x184] ss:$8 sps:$4 sm:$0xff]  }
 0x21b   : > { %2196 = vmatpush1.bf16.msra.mxu1 %v3625_v50  ;;  %v3723_v50 = vld [vmem:[%s4571_s7 + $0x194] ss:$8 sps:$4 sm:$0xff]  }
 0x21c   : > { %2197 = vmatprep.subr.bf16.mxu1 %v3630_v52  ;;  %v3727_v52 = vld [vmem:[%s4571_s7 + $0x180] ss:$8 sps:$4 sm:$0xff]  }
 0x21d   : > { %v1132_v53 = vld [vmem:[#allocation4 + $0xc] sm:$0x11] }
 0x21e   : > { %v3827_v55 = vcombine.low %v1102_v40, %v1132_v53  ;;  %v3064_v56 = vcombine.high %v3059_v48, %v1132_v53  ;;  %v3705_v40 = vld [vmem:[%s4571_s7 + $0x1c4] ss:$8 sps:$4 sm:$0xff]   ;;  %v3715_v48 = vld [vmem:[%s4571_s7 + $0x1a0] ss:$8 sps:$4 sm:$0xff]   ;;  %v1184_v53 = vlaneseq }
 0x21f   : > { %2198 = vmatpush1.bf16.msra.mxu1 %v3628_v54 }
 0x220   : > { %1482 = vmatprep.mubr.bf16.mxu0 %v3064_v56  ;;  %2199 = vmatprep.subr.bf16.mxu1 %v3633_v57  ;;  %v4294_v54 = vshrl.u32 %v1184_v53, 7  ;;  %v1182_v56 = vld [vmem:[%s4570_s6] sm:$0x3]  ;;  %v3750_v53 = vld [vmem:[%s4571_s7 + $0x2e4] ss:$8 sps:$4 sm:$0xff]  }
 0x221   : > { %1483 = vmatmul.mubr.bf16.vlgmr.msra.gmra.mxu0 %v3827_v55 }
 0x222   : > { %2237 = vmatpush1.bf16.msra.mxu0 %v3637_v58  ;;  %v1186_v55 = vsub.s32 0, %v4294_v54  ;;  %v1190_v57 = vsub.s32 1, %v4294_v54 }
 0x223   : > { %2238 = vmatprep.subr.bf16.mxu0 %v3645_v59  ;;  %2200 = vmatpush1.bf16.msra.mxu1 %v3631_v60 }
 0x224   : > { %2201 = vmatprep.subr.bf16.mxu1 %v3636_v61  ;;  %v1187_v59 = vrot.slane %v1182_v56, %v1186_v55  ;;  %v1191_v60 = vrot.slane %v1182_v56, %v1190_v57  ;;  %v3748_v56 = vld [vmem:[%s4571_s7 + $0x2e0] ss:$8 sps:$4 sm:$0xff]  }
 0x226   : > { %2239 = vmatpush1.bf16.msra.mxu0 %v3643_v62 }
 0x227   : > { %2240 = vmatprep.subr.bf16.mxu0 %v3651_v63  ;;  %2202 = vmatpush1.bf16.msra.mxu1 %v3634_v1 }
 0x228   : > { %2203 = vmatprep.subr.bf16.mxu1 %v3642_v2 }
 0x22a   : > { %2241 = vmatpush1.bf16.msra.mxu0 %v3649_v3 }
 0x22b   : > { %2242 = vmatprep.subr.bf16.mxu0 %v3657_v4  ;;  %2204 = vmatpush1.bf16.msra.mxu1 %v3640_v5 }
 0x22c   : > { %2205 = vmatprep.subr.bf16.mxu1 %v3648_v6 }
 0x22e   : > { %2243 = vmatpush1.bf16.msra.mxu0 %v3655_v7 }
 0x22f   : > { %2244 = vmatprep.subr.bf16.mxu0 %v3663_v0  ;;  %2206 = vmatpush1.bf16.msra.mxu1 %v3646_v8 }
 0x230   : > { %2207 = vmatprep.subr.bf16.mxu1 %v3654_v9 }
 0x232   : > { %2245 = vmatpush1.bf16.msra.mxu0 %v3661_v10 }
 0x233   : > { %2246 = vmatprep.subr.bf16.mxu0 %v3669_v11  ;;  %2208 = vmatpush1.bf16.msra.mxu1 %v3652_v12 }
 0x234   : > { %2209 = vmatprep.subr.bf16.mxu1 %v3660_v13 }
 0x236   : > { %2247 = vmatpush1.bf16.msra.mxu0 %v3667_v14 }
 0x237   : > { %2248 = vmatprep.subr.bf16.mxu0 %v3675_v15  ;;  %2210 = vmatpush1.bf16.msra.mxu1 %v3658_v16 }
 0x238   : > { %2211 = vmatprep.subr.bf16.mxu1 %v3666_v17 }
 0x23a   : > { %2249 = vmatpush1.bf16.msra.mxu0 %v3673_v18  ;;  %v3712_v18 = vld [vmem:[%s4571_s7 + $0x270] ss:$8 sps:$4 sm:$0xff]  }
 0x23b   : > { %2250 = vmatprep.subr.bf16.mxu0 %v3681_v19  ;;  %2212 = vmatpush2.bf16.msra.mxu1 %v3664_v20 }
 0x23c   : > { %2213 = vmatprep.subr.bf16.mxu1 %v3672_v21  ;;  %v3720_v21 = vld [vmem:[%s4571_s7 + $0x264] ss:$8 sps:$4 sm:$0xff]  }
 0x23e   : > { %2251 = vmatpush1.bf16.msra.mxu0 %v3679_v22 }
 0x23f   : > { %2252 = vmatprep.subr.bf16.mxu0 %v3687_v23  ;;  %2214 = vmatpush2.bf16.msra.mxu1 %v3670_v24 }
 0x240   : > { %2215 = vmatprep.subr.bf16.mxu1 %v3678_v25  ;;  %v3718_v25 = vld [vmem:[%s4571_s7 + $0x260] ss:$8 sps:$4 sm:$0xff]  }
 0x242   : > { %2253 = vmatpush2.bf16.msra.mxu0 %v3685_v26 }
 0x243   : > { %2216 = vmatpush2.bf16.msra.mxu1 %v3676_v27  ;;  %2254 = vmatprep.subr.bf16.mxu0 %v3693_v32  ;;  %v3724_v32 = vld [vmem:[%s4571_s7 + $0x250] ss:$8 sps:$4 sm:$0xff]  }
 0x244   : > { %2217 = vmatprep.subr.bf16.mxu1 %v3684_v28  ;;  %v3726_v28 = vld [vmem:[%s4571_s7 + $0x254] ss:$8 sps:$4 sm:$0xff]  }
 0x246   : > { %2255 = vmatpush2.bf16.msra.mxu0 %v3691_v33 }
 0x247   : > { %2218 = vmatpush2.bf16.msra.mxu1 %v3682_v29  ;;  %2256 = vmatprep.subr.bf16.mxu0 %v3699_v36 }
 0x248   : > { %2219 = vmatprep.subr.bf16.mxu1 %v3690_v31 }
 0x24a   : > { %2257 = vmatpush2.bf16.msra.mxu0 %v3697_v37  ;;  %v3732_v37 = vld [vmem:[%s4571_s7 + $0x244] ss:$8 sps:$4 sm:$0xff]  }
 0x24b   : > { %2220 = vmatpush2.bf16.msra.mxu1 %v3688_v30  ;;  %2258 = vmatprep.subr.bf16.mxu0 %v3705_v40  ;;  %v3730_v40 = vld [vmem:[%s4571_s7 + $0x240] ss:$8 sps:$4 sm:$0xff]  }
 0x24c   : > { %2221 = vmatprep.subr.bf16.mxu1 %v3696_v34 }
 0x24e   : > { %2259 = vmatpush2.bf16.msra.mxu0 %v3703_v41 }
 0x24f   : > { %2222 = vmatpush2.bf16.msra.mxu1 %v3694_v35  ;;  %2260 = vmatprep.subr.bf16.mxu0 %v3711_v44  ;;  %v3733_v44 = vld [vmem:[%s4571_s7 + $0x230] ss:$8 sps:$4 sm:$0xff]  }
 0x250   : > { %2223 = vmatprep.subr.bf16.mxu1 %v3702_v38 }
 0x252   : > { %2261 = vmatpush2.bf16.msra.mxu0 %v3709_v45  ;;  %v3738_v45 = vld [vmem:[%s4571_s7 + $0x224] ss:$8 sps:$4 sm:$0xff]  }
 0x253   : > { %2224 = vmatpush2.bf16.msra.mxu1 %v3700_v39  ;;  %2262 = vmatprep.subr.bf16.mxu0 %v3717_v47  ;;  %v3741_v47 = vld [vmem:[%s4571_s7 + $0x214] ss:$8 sps:$4 sm:$0xff]  }
 0x254   : > { %2225 = vmatprep.subr.bf16.mxu1 %v3708_v42  ;;  %v3735_v42 = vld [vmem:[%s4571_s7 + $0x234] ss:$8 sps:$4 sm:$0xff]  }
 0x256   : > { %2263 = vmatpush2.bf16.msra.mxu0 %v3715_v48  ;;  %v3739_v48 = vld [vmem:[%s4571_s7 + $0x210] ss:$8 sps:$4 sm:$0xff]  }
 0x257   : > { %2226 = vmatpush2.bf16.msra.mxu1 %v3706_v43  ;;  %2264 = vmatprep.subr.bf16.mxu0 %v3723_v50  ;;  %v3742_v50 = vld [vmem:[%s4571_s7 + $0x200] ss:$8 sps:$4 sm:$0xff]  }
 0x258   : > { %2277 = vmatprep.subr.bf16.mxu1 %v3714_v46  ;;  %v3736_v46 = vld [vmem:[%s4571_s7 + $0x220] ss:$8 sps:$4 sm:$0xff]  }
 0x25a   : > { %2265 = vmatpush2.bf16.msra.mxu0 %v3721_v49  ;;  %v3744_v49 = vld [vmem:[%s4571_s7 + $0x204] ss:$8 sps:$4 sm:$0xff]  }
 0x25b   : > { %2266 = vmatprep.subr.bf16.mxu0 %v3729_v51  ;;  %v3747_v51 = vld [vmem:[%s4571_s7 + $0x2f4] ss:$8 sps:$4 sm:$0xff]  }
 0x25e   : > { %2267 = vmatpush2.bf16.msra.mxu0 %v3727_v52  ;;  %v3745_v52 = vld [vmem:[%s4571_s7 + $0x2f0] ss:$8 sps:$4 sm:$0xff]  }
 0x2da   : > { %v1527_v58 = vpop.f32.mrf.mxu1 }
 0x2dc   : > { %v1529_v62 = vpop.f32.mrf.mxu1 }
 0x2de   : > { %v1531_v5 = vpop.f32.mrf.mxu1 }
 0x2e0   : > { %v1533_v13 = vpop.f32.mrf.mxu1 }
 0x2e1   : > { %v1484_v61 = vpop.f32.mrf.mxu0 }
 0x2e2   : > { %v1485_v63 = vadd.f32 %v1484_v61, %v1187_v59  ;;  %v3754_v61 = vld [vmem:[%s4571_s7 + $0x2c0] ss:$8 sps:$4 sm:$0xff]  }
 0x2e3   : > { %v1486_v1 = vpop.f32.mrf.mxu0 }
 0x2e4   : > { %v1528_v2 = vadd.f32 %v1527_v58, %v1485_v63  ;;  %v1487_v3 = vadd.f32 %v1486_v1, %v1191_v60  ;;  %v3753_v58 = vld [vmem:[%s4571_s7 + $0x2d4] ss:$8 sps:$4 sm:$0xff]   ;;  %v3757_v63 = vld [vmem:[%s4571_s7 + $0x2b0] ss:$8 sps:$4 sm:$0xff]   ;;  %v3762_v1 = vld [vmem:[%s4571_s7 + $0x2a4] ss:$8 sps:$4 sm:$0xff]  }
 0x2e5   : > { %v1488_v4 = vpop.f32.mrf.mxu0 }
 0x2e6   : > { %vm1536_vm5 = vcmp.gt.f32.partialorder %v1528_v2, 0.0  ;;  %v1540_v6 = vmul.f32 0.25, %v1528_v2  ;;  %v1530_v7 = vadd.f32 %v1529_v62, %v1487_v3  ;;  %v1489_v0 = vadd.f32 %v1488_v4, %v1187_v59  ;;  %v3751_v59 = vld [vmem:[%s4571_s7 + $0x2d0] ss:$8 sps:$4 sm:$0xff]   ;;  %v3759_v62 = vld [vmem:[%s4571_s7 + $0x2b4] ss:$8 sps:$4 sm:$0xff]  }
 0x2e7   : > { %v1490_v8 = vpop.f32.mrf.mxu0  ;;  %v3765_v3 = vld [vmem:[%s4571_s7 + $0x294] ss:$8 sps:$4 sm:$0xff]   ;;  %v3763_v4 = vld [vmem:[%s4571_s7 + $0x290] ss:$8 sps:$4 sm:$0xff]  }
 0x2e8   : > { %vm1537_vm6 = vcmp.gt.f32.partialorder %v1530_v7, 0.0  ;;  %v1541_v9 = vmul.f32 0.25, %v1530_v7  ;;  %v1532_v10 = vadd.f32 %v1531_v5, %v1489_v0  ;;  %v1544_v11 = vsel %vm1536_vm5, %v1528_v2, %v1540_v6  ;;  %v3760_v2 = vld [vmem:[%s4571_s7 + $0x2a0] ss:$8 sps:$4 sm:$0xff]   ;;  %v3768_v5 = vld [vmem:[%s4571_s7 + $0x284] ss:$8 sps:$4 sm:$0xff]  }
 0x2e9   : > { %v1491_v12 = vadd.f32 %v1490_v8, %v1191_v60  ;;  %v3282_v20 = vpack.c.bf16 %v1544_v11, %v1544_v11  ;;  %v3756_v60 = vld [vmem:[%s4571_s7 + $0x2c4] ss:$8 sps:$4 sm:$0xff]   ;;  %v3766_v6 = vld [vmem:[%s4571_s7 + $0x280] ss:$8 sps:$4 sm:$0xff]   ;;  %v3769_v8 = vld [vmem:[%s4573_s9 + $0x78] sm:$0xff]  }
 0x2ea   : > { %vm1538_vm7 = vcmp.gt.f32.partialorder %v1532_v10, 0.0  ;;  %v1542_v14 = vmul.f32 0.25, %v1532_v10  ;;  %v1545_v15 = vsel %vm1537_vm6, %v1530_v7, %v1541_v9  ;;  %v3770_v9 = vld [vmem:[%s4573_s9 + $0x38] sm:$0xff]   ;;  %3350 = vmatprep.subr.bf16.mxu0 %v3769_v8 }
 0x2eb   : > { %v1534_v16 = vadd.f32 %v1533_v13, %v1491_v12  ;;  %v3283_v17 = vpack.c.bf16 %v1545_v15, %v1545_v15  ;;  %v3774_v12 = vld [vmem:[%s4573_s9 + $0x138] sm:$0xff]   ;;  %v3777_v13 = vld [vmem:[%s4573_s9 + $0x170] sm:$0xff]  }
 0x2ec   : > { %v1546_v19 = vsel %vm1538_vm7, %v1532_v10, %v1542_v14  ;;  %v3771_v10 = vld [vmem:[%s4573_s9 + $0x70] sm:$0xff]  }
 0x2ed   : > { %v4311_v22 = vpack.c.bf16 %v1546_v19, %v1544_v11  ;;  %vm1539_vm8 = vcmp.gt.f32.partialorder %v1534_v16, 0.0  ;;  %v1543_v23 = vmul.f32 0.25, %v1534_v16  ;;  %2227 = vmatprep.mubr.bf16.mxu1 %v3283_v17  ;;  %v3773_v11 = vld [vmem:[%s4573_s9 + $0x178] sm:$0xff]   ;;  %v3772_v14 = vld [vmem:[%s4573_s9 + $0x30] sm:$0xff]   ;;  %v3776_v17 = vld [vmem:[%s4573_s9 + $0x28] sm:$0xff]  }
 0x2ee   : > { %2228 = vmatmul.mubr.bf16.vlgmr.msra.gmra.mxu1 %v3282_v20  ;;  %v3780_v19 = vld [vmem:[%s4573_s9 + $0x20] sm:$0xff]   ;;  %v3781_v20 = vld [vmem:[%s4573_s9 + $0x168] sm:$0xff]  }
 0x2ef   : > { %v1547_v24 = vsel %vm1539_vm8, %v1534_v16, %v1543_v23  ;;  %2278 = vmatpush1.bf16.msra.mxu1 %v3712_v18  ;;  %v1553_v26 = vshll.u32 %v4311_v22, 16  ;;  %v1551_v33 = vshrl.u32 %v4311_v22, 16  ;;  %v1566_v7 = vrot.slane %v4311_v22, 1  ;;  %v3778_v16 = vld [vmem:[%s4573_s9 + $0x130] sm:$0xff]   ;;  %v3779_v18 = vld [vmem:[%s4573_s9 + $0x60] sm:$0xff]   ;;  %v3783_v22 = vld [vmem:[%s4573_s9 + $0x58] sm:$0xff]  }
 0x2f0   : > { %v1549_v27 = vpack.c.bf16 %v1547_v24, %v1545_v15  ;;  %2279 = vmatprep.subr.bf16.mxu1 %v3720_v21  ;;  %v3775_v15 = vld [vmem:[%s4573_s9 + $0x68] sm:$0xff]   ;;  %v3784_v23 = vld [vmem:[%s4573_s9 + $0x18] sm:$0xff]   ;;  %v3785_v24 = vld [vmem:[%s4573_s9 + $0x160] sm:$0xff]  }
 0x2f1   : > { %v1555_v29 = vrot.slane %v1553_v26, 1  ;;  %v3286_v0 = vcombine.low %v1566_v7, %v1566_v7  ;;  %v3782_v21 = vld [vmem:[%s4573_s9 + $0x128] sm:$0xff]   ;;  %v3787_v26 = vld [vmem:[%s4573_s9 + $0x50] sm:$0xff]  }
 0x2f2   : > { %v1567_v30 = vrot.slane %v1549_v27, 1  ;;  %v1560_v31 = vshll.u32 %v1549_v27, 16  ;;  %v1558_v35 = vshrl.u32 %v1549_v27, 16  ;;  %v3788_v27 = vld [vmem:[%s4573_s9 + $0x10] sm:$0xff]  }
 0x2f3   : > { %2280 = vmatpush1.bf16.msra.mxu1 %v3718_v25  ;;  %v1556_v38 = vor.u32 %v1555_v29, %v1551_v33  ;;  %v3786_v25 = vld [vmem:[%s4573_s9 + $0x120] sm:$0xff]   ;;  %v3790_v29 = vld [vmem:[%s4573_s9 + $0x118] sm:$0xff]   ;;  %v3794_v33 = vld [vmem:[%s4573_s9 + $0x110] sm:$0xff]  }
 0x2f4   : > { %2281 = vmatprep.subr.bf16.mxu1 %v3726_v28  ;;  %v3287_v34 = vcombine.low %v1567_v30, %v1567_v30  ;;  %v1562_v36 = vrot.slane %v1560_v31, 1  ;;  %v3789_v28 = vld [vmem:[%s4573_s9 + $0x158] sm:$0xff]   ;;  %v3791_v30 = vld [vmem:[%s4573_s9 + $0x48] sm:$0xff]  }
 0x2f5   : > { %v3284_v43 = vcombine.low %v1556_v38, %v1556_v38  ;;  %v3792_v31 = vld [vmem:[%s4573_s9 + $0x8] sm:$0xff]   ;;  %v3801_v38 = vld [vmem:[%s4573_s9 + $0xf8] sm:$0xff]  }
 0x2f6   : > { %2309 = vmatprep.mubr.bf16.mxu1 %v3287_v34  ;;  %v1563_v39 = vor.u32 %v1562_v36, %v1558_v35  ;;  %v3795_v34 = vld [vmem:[%s4573_s9 + $0x40] sm:$0xff]   ;;  %v3797_v36 = vld [vmem:[%s4573_s9 + $0x148] sm:$0xff]  }
 0x2f7   : > { %2282 = vmatpush1.bf16.msra.mxu1 %v3724_v32  ;;  %v3793_v32 = vld [vmem:[%s4573_s9 + $0x150] sm:$0xff]   ;;  %v3796_v35 = vld [vmem:[%s4573_s9] sm:$0xff]  }
 0x2f8   : > { %v3285_v41 = vcombine.low %v1563_v39, %v1563_v39  ;;  %2283 = vmatprep.subr.bf16.mxu1 %v3732_v37  ;;  %v3798_v37 = vld [vmem:[%s4573_s9 + $0x108] sm:$0xff]   ;;  %v3803_v39 = vld [vmem:[%s4573_s9 + $0x140] sm:$0xff]  }
 0x2fa   : > { %2268 = vmatprep.mubr.bf16.mxu0 %v3285_v41 }
 0x2fb   : > { %2269 = vmatmul.mubr.bf16.vlgmr.msra.gmra.mxu0 %v3284_v43  ;;  %2284 = vmatpush1.bf16.msra.mxu1 %v3730_v40  ;;  %v3804_v40 = vld [vmem:[%s4573_s9 + $0x100] sm:$0xff]  }
 0x2fc   : > { %2285 = vmatprep.subr.bf16.mxu1 %v3735_v42  ;;  %3351 = vmatpush3.bf16.msra.mxu0 %v3770_v9 }
 0x2fd   : > { %3352 = vmatprep.subr.bf16.mxu0 %v3771_v10 }
 0x2ff   : > { %2286 = vmatpush1.bf16.msra.mxu1 %v3733_v44 }
 0x300   : > { %2287 = vmatprep.subr.bf16.mxu1 %v3738_v45  ;;  %3353 = vmatpush3.bf16.msra.mxu0 %v3772_v14 }
 0x301   : > { %3354 = vmatprep.subr.bf16.mxu0 %v3775_v15 }
 0x303   : > { %2288 = vmatpush1.bf16.msra.mxu1 %v3736_v46 }
 0x304   : > { %2289 = vmatprep.subr.bf16.mxu1 %v3741_v47  ;;  %3355 = vmatpush3.bf16.msra.mxu0 %v3776_v17 }
 0x305   : > { %3356 = vmatprep.subr.bf16.mxu0 %v3779_v18 }
 0x307   : > { %2290 = vmatpush1.bf16.msra.mxu1 %v3739_v48 }
 0x308   : > { %2291 = vmatprep.subr.bf16.mxu1 %v3744_v49  ;;  %3357 = vmatpush3.bf16.msra.mxu0 %v3780_v19  ;;  %v1682_v49 = vld [vmem:[%s4572_s8] sm:$0x3] }
 0x309   : > { %3358 = vmatprep.subr.bf16.mxu0 %v3783_v22 }
 0x30b   : > { %2292 = vmatpush1.bf16.msra.mxu1 %v3742_v50  ;;  %v1687_v50 = vrot.slane %v1682_v49, %v1186_v55 }
 0x30c   : > { %2293 = vmatprep.subr.bf16.mxu1 %v3747_v51  ;;  %3359 = vmatpush3.bf16.msra.mxu0 %v3784_v23  ;;  %v1691_v51 = vrot.slane %v1682_v49, %v1190_v57 }
 0x30d   : > { %3360 = vmatprep.subr.bf16.mxu0 %v3787_v26  ;;  %v3809_v26 = vld [vmem:[%s4573_s9 + $0xe8] sm:$0xff]  }
 0x30f   : > { %2294 = vmatpush2.bf16.msra.mxu1 %v3745_v52 }
 0x310   : > { %2295 = vmatprep.subr.bf16.mxu1 %v3750_v53  ;;  %3361 = vmatpush3.bf16.msra.mxu0 %v3788_v27 }
 0x311   : > { %3362 = vmatprep.subr.bf16.mxu0 %v3791_v30  ;;  %v3813_v30 = vld [vmem:[%s4573_s9 + $0xe0] sm:$0xff]  }
 0x313   : > { %2296 = vmatpush2.bf16.msra.mxu1 %v3748_v56 }
 0x314   : > { %2297 = vmatprep.subr.bf16.mxu1 %v3753_v58  ;;  %3363 = vmatpush3.bf16.msra.mxu0 %v3792_v31  ;;  %v3814_v31 = vld [vmem:[%s4573_s9 + $0xa0] sm:$0xff]  }
 0x315   : > { %3364 = vmatprep.subr.bf16.mxu0 %v3795_v34  ;;  %v3817_v34 = vld [vmem:[%s4573_s9 + $0xd0] sm:$0xff]  }
 0x317   : > { %2298 = vmatpush2.bf16.msra.mxu1 %v3751_v59 }
 0x318   : > { %2299 = vmatprep.subr.bf16.mxu1 %v3756_v60  ;;  %3365 = vmatpush3.bf16.msra.mxu0 %v3796_v35  ;;  %v3818_v35 = vld [vmem:[%s4573_s9 + $0x90] sm:$0xff]  }
 0x319   : > { %3372 = vmatprep.subr.bf16.mxu0 %v3801_v38  ;;  %v3821_v38 = vld [vmem:[%s4573_s9 + $0xc0] sm:$0xff]  }
 0x31b   : > { %2300 = vmatpush2.bf16.msra.mxu1 %v3754_v61 }
 0x31c   : > { %2301 = vmatprep.subr.bf16.mxu1 %v3759_v62 }
 0x31f   : > { %2302 = vmatpush2.bf16.msra.mxu1 %v3757_v63 }
 0x320   : > { %2303 = vmatprep.subr.bf16.mxu1 %v3762_v1 }
 0x323   : > { %2304 = vmatpush2.bf16.msra.mxu1 %v3760_v2 }
 0x324   : > { %2305 = vmatprep.subr.bf16.mxu1 %v3765_v3 }
 0x327   : > { %2306 = vmatpush2.bf16.msra.mxu1 %v3763_v4 }
 0x328   : > { %2307 = vmatprep.subr.bf16.mxu1 %v3768_v5 }
 0x32b   : > { %2308 = vmatpush2.bf16.msra.mxu1 %v3766_v6 }
 0x32c   : > { %3394 = vmatprep.subr.bf16.mxu1 %v3773_v11 }
 0x32e   : > { %2310 = vmatmul.mubr.bf16.vlgmr.msra.gmra.mxu1 %v3286_v0 }
 0x32f   : > { %3395 = vmatpush3.bf16.msra.mxu1 %v3774_v12 }
 0x330   : > { %3396 = vmatprep.subr.bf16.mxu1 %v3777_v13 }
 0x333   : > { %3397 = vmatpush3.bf16.msra.mxu1 %v3778_v16 }
 0x334   : > { %3398 = vmatprep.subr.bf16.mxu1 %v3781_v20  ;;  %v3802_v20 = vld [vmem:[%s4573_s9 + $0xb8] sm:$0xff]  }
 0x337   : > { %3399 = vmatpush3.bf16.msra.mxu1 %v3782_v21  ;;  %v3805_v21 = vld [vmem:[%s4573_s9 + $0xf0] sm:$0xff]  }
 0x338   : > { %3400 = vmatprep.subr.bf16.mxu1 %v3785_v24 }
 0x33b   : > { %3401 = vmatpush3.bf16.msra.mxu1 %v3786_v25  ;;  %v3808_v25 = vld [vmem:[%s4573_s9 + $0xb0] sm:$0xff]  }
 0x33c   : > { %3402 = vmatprep.subr.bf16.mxu1 %v3789_v28 }
 0x33f   : > { %3403 = vmatpush3.bf16.msra.mxu1 %v3790_v29  ;;  %v3812_v29 = vld [vmem:[%s4573_s9 + $0xa8] sm:$0xff]  }
 0x340   : > { %3404 = vmatprep.subr.bf16.mxu1 %v3793_v32  ;;  %v3815_v32 = vld [vmem:[%s4573_s9 + $0xd8] sm:$0xff]  }
 0x343   : > { %3405 = vmatpush3.bf16.msra.mxu1 %v3794_v33  ;;  %v3816_v33 = vld [vmem:[%s4573_s9 + $0x98] sm:$0xff]  }
 0x344   : > { %3406 = vmatprep.subr.bf16.mxu1 %v3797_v36  ;;  %v3819_v36 = vld [vmem:[%s4573_s9 + $0xc8] sm:$0xff]  }
 0x347   : > { %3407 = vmatpush3.bf16.msra.mxu1 %v3798_v37  ;;  %v3820_v37 = vld [vmem:[%s4573_s9 + $0x88] sm:$0xff]  }
 0x348   : > { %3408 = vmatprep.subr.bf16.mxu1 %v3803_v39  ;;  %v3822_v39 = vld [vmem:[%s4573_s9 + $0x80] sm:$0xff]  }
 0x34b   : > { %3409 = vmatpush3.bf16.msra.mxu1 %v3804_v40 }
 0x3ae   : > { %v2229_v41 = vpop.f32.mrf.mxu1 }
 0x3af   : > { %v2230_v52 = vadd.f32 %v2229_v41, %v1687_v50  ;;  %v3222_v50 = vld [vmem:[%s4574_s10] ss:$0 sm:$0xff] }
 0x3b0   : > { %v2231_v42 = vpop.f32.mrf.mxu1 }
 0x3b1   : > { %v2232_v53 = vadd.f32 %v2231_v42, %v1691_v51 }
 0x3b2   : > { %v2233_v43 = vpop.f32.mrf.mxu1 }
 0x3b4   : > { %v2234_v44 = vpop.f32.mrf.mxu1 }
 0x3bb   : > { %v2270_v45 = vpop.f32.mrf.mxu0 }
 0x3bc   : > { %v2271_v56 = vadd.f32 %v2270_v45, %v2230_v52 }
 0x3bd   : > { %v2272_v46 = vpop.f32.mrf.mxu0 }
 0x3be   : > { %v2273_v59 = vadd.f32 %v2272_v46, %v2232_v53 }
 0x3bf   : > { %v2274_v47 = vpop.f32.mrf.mxu0 }
 0x3c1   : > { %v2275_v48 = vpop.f32.mrf.mxu0 }
 0x3ee   : > { %v2311_v58 = vpop.f32.mrf.mxu1 }
 0x3ef   : > { %v2312_v60 = vadd.f32 %v2311_v58, %v2271_v56 }
 0x3f0   : > { %v2313_v61 = vpop.f32.mrf.mxu1 }
 0x3f1   : > { %vm2318_vm9 = vcmp.gt.f32.partialorder %v2312_v60, 0.0  ;;  %v2320_v62 = vmul.f32 0.25, %v2312_v60  ;;  %v2314_v63 = vadd.f32 %v2313_v61, %v2273_v59 }
 0x3f2   : > { %v2315_v1 = vpop.f32.mrf.mxu1 }
 0x3f3   : > { %v2322_v2 = vsel %vm2318_vm9, %v2312_v60, %v2320_v62  ;;  %vm2319_vm10 = vcmp.gt.f32.partialorder %v2314_v63, 0.0  ;;  %v2321_v3 = vmul.f32 0.25, %v2314_v63 }
 0x3f4   : > { %v2324_v4 = vpack.c.bf16 %v2322_v2, %v2322_v2  ;;  %v2316_v5 = vpop.f32.mrf.mxu1 }
 0x3f5   : > { %v2323_v55 = vsel %vm2319_vm10, %v2314_v63, %v2321_v3 }
 0x3f6   : > { %v2329_v6 = vshll.u32 %v2324_v4, 16  ;;  %v2325_v54 = vpack.c.bf16 %v2323_v55, %v2323_v55  ;;  %v3281_v57 = vpack.c.bf16 %v2323_v55, %v2322_v2  ;;  %v2342_v0 = vrot.slane %v2324_v4, 1 }
 0x3f7   : > { %v2327_v10 = vshrl.u32 %v2324_v4, 16 }
 0x3f8   : > { %v2331_v7 = vrot.slane %v2329_v6, 1  ;;  %v2336_v8 = vshll.u32 %v2325_v54, 16  ;;  %v2343_v9 = vrot.slane %v2325_v54, 1  ;;  %2356 = vst [vmem:[#allocation6 + $0x10] sm:$0x77] %v3281_v57  ;;  %v2334_v11 = vshrl.u32 %v2325_v54, 16 }
 0x3fa   : > { %v2338_v12 = vrot.slane %v2336_v8, 1  ;;  %v3221_v13 = vcombine.low %v2342_v0, %v2343_v9  ;;  %v2332_v14 = vor.u32 %v2331_v7, %v2327_v10 }
 0x3fc   : > { %v2339_v15 = vor.u32 %v2338_v12, %v2334_v11  ;;  %2358 = vst [vmem:[#allocation6 + $0x8] sm:$0x77] %v3221_v13 }
 0x3fe   : > { %v3220_v16 = vcombine.low %v2332_v14, %v2339_v15 }
 0x3ff   : > { %v2359_v17 = vld [vmem:[#allocation6 + $0x10] sm:$0x77] }
 0x400   : > { %2357 = vst [vmem:[#allocation6] sm:$0x77] %v3220_v16  ;;  %v3223_v18 = vcombine.low %v2359_v17, %v2359_v17  ;;  %v3224_v19 = vcombine.high %v2359_v17, %v2359_v17 }
 0x402   : > { %2806 = vmatprep.mubr.bf16.mxu0 %v3224_v19 }
 0x403   : > { %v2361_v22 = vld [vmem:[#allocation6 + $0x8] sm:$0x77]  ;;  %2807 = vmatmul.mubr.bf16.vlgmr.msra.gmra.mxu0 %v3223_v18 }
 0x404   : > { %v3227_v23 = vcombine.low %v2361_v22, %v2361_v22  ;;  %v3228_v24 = vcombine.high %v2361_v22, %v2361_v22  ;;  %3373 = vmatpush3.bf16.msra.mxu0 %v3802_v20 }
 0x405   : > { %3374 = vmatprep.subr.bf16.mxu0 %v3805_v21 }
 0x406   : > { %2886 = vmatprep.mubr.bf16.mxu1 %v3228_v24 }
 0x407   : > { %2887 = vmatmul.mubr.bf16.vlgmr.msra.gmra.mxu1 %v3227_v23  ;;  %v2360_v27 = vld [vmem:[#allocation6] sm:$0x77] }
 0x408   : > { %v3226_v28 = vcombine.high %v2360_v27, %v2360_v27  ;;  %3375 = vmatpush3.bf16.msra.mxu0 %v3808_v25  ;;  %v3225_v40 = vcombine.low %v2360_v27, %v2360_v27 }
 0x409   : > { %3376 = vmatprep.subr.bf16.mxu0 %v3809_v26 }
 0x40a   : > { %2846 = vmatprep.mubr.bf16.mxu0 %v3226_v28 }
 0x40c   : > { %3377 = vmatpush3.bf16.msra.mxu0 %v3812_v29 }
 0x40d   : > { %3378 = vmatprep.subr.bf16.mxu0 %v3813_v30 }
 0x410   : > { %3379 = vmatpush3.bf16.msra.mxu0 %v3814_v31 }
 0x411   : > { %3380 = vmatprep.subr.bf16.mxu0 %v3815_v32 }
 0x414   : > { %3381 = vmatpush3.bf16.msra.mxu0 %v3816_v33 }
 0x415   : > { %3382 = vmatprep.subr.bf16.mxu0 %v3817_v34 }
 0x418   : > { %3383 = vmatpush3.bf16.msra.mxu0 %v3818_v35 }
 0x419   : > { %3384 = vmatprep.subr.bf16.mxu0 %v3819_v36 }
 0x41c   : > { %3385 = vmatpush3.bf16.msra.mxu0 %v3820_v37 }
 0x41d   : > { %3386 = vmatprep.subr.bf16.mxu0 %v3821_v38 }
 0x420   : > { %3387 = vmatpush3.bf16.msra.mxu0 %v3822_v39 }
 0x423   : > { %2847 = vmatmul.mubr.bf16.vlgmr.msra.gmra.mxu0 %v3225_v40 }
 0x4c3   : > { %v3366_v41 = vpop.f32.mrf.mxu0 }
 0x4c5   : > { %v3367_v42 = vpop.f32.mrf.mxu0 }
 0x4c6   : > { %v3368_v49 = vadd.f32 %v3367_v42, %v3366_v41 }
 0x4c7   : > { %v3410_v43 = vpop.f32.mrf.mxu1  ;;  %v3369_v44 = vpop.f32.mrf.mxu0 }
 0x4c8   : > { %v2809_v53 = vadd.f32 %v3368_v49, %v3222_v50 }
 0x4c9   : > { %v3411_v45 = vpop.f32.mrf.mxu1  ;;  %v3370_v46 = vpop.f32.mrf.mxu0 }
 0x4ca   : > { %v3412_v59 = vadd.f32 %v3411_v45, %v3410_v43 }
 0x4cb   : > { %v3413_v47 = vpop.f32.mrf.mxu1 }
 0x4cd   : > { %v3414_v48 = vpop.f32.mrf.mxu1 }
 0x4e3   : > { %v3388_v51 = vpop.f32.mrf.mxu0 }
 0x4e5   : > { %v3389_v52 = vpop.f32.mrf.mxu0 }
 0x4e6   : > { %v3390_v56 = vadd.f32 %v3389_v52, %v3388_v51 }
 0x4e7   : > { %v3391_v58 = vpop.f32.mrf.mxu0 }
 0x4e8   : > { %v2849_v60 = vadd.f32 %v3390_v56, %v2809_v53 }
 0x4e9   : > { %v3392_v61 = vpop.f32.mrf.mxu0 }
 0x4ea   : > { %v2889_v62 = vadd.f32 %v3412_v59, %v2849_v60 }
 0x4ec   : > { %3823 = vtanh.f32 %v2889_v62 }
 0x4f9   : > { %v3824_v63 = vpop.eup %3823 }
 0x4fa   : > { %2896 = vst.msk [vmem:[%s428_s25] sm:$0x3f] %vm2895_vm11, %v3824_v63 }
 0x4fb PF: > { %s23_s17 = sadd.s32 1, %s3920_s17  }
 0x4fc   : > { %p20_p3 = scmp.ge.s32.totalorder %s23_s17, 4  }
 0x4fe   :  { %22 = sbr.rel (!%p20_p3) target bundleno = 2 (0x2), region = 107 }
 0x503   :  { %2916 = vsyncpa [#allocation8], 1 }
 0x504   :  { %2918 = vsyncpa [#allocation8 + $0x1], 1 }
 0x505   :  { %2919 = vsyncpa [#allocation10], 1 }

</bundles_post_ra>
